<compile_context>
chip_gen: v7x
topology: tpu7x:2x2x1
jax: 0.10.0
libtpu: 0.0.40
codegen_flags: <defaults>
</compile_context>

<pallas_src>
import functools
import math

import jax
import jax.numpy as jnp
from jax import lax
from jax.experimental import pallas as pl
from jax.experimental.pallas import tpu as pltpu


# ----------------------------------------------------------------------------
# Fused TwoCon kernel (single grid step, batch folded, channels-major layout)
# ----------------------------------------------------------------------------
def twocon_kernel(x_ref, w1_ref, b1_ref, w2_ref, b2_ref, o_ref, *,
                  N, H, W, Cin, Cmid, Cout):
    """relu(conv2(relu(conv1(x)))) with 3x3 'same' convs, fully in VMEM.

    x_ref  : (N, Cin, H*W)    input, channels-major, spatial flattened on lanes
    w1_ref : (9, Cmid, Cin)   conv1 weights per tap (tap = dy*3+dx), f32
    b1_ref : (Cmid, 1)        conv1 bias, f32
    w2_ref : (9, Cout, Cmid)  conv2 weights per tap, bf16
    b2_ref : (Cout, 1)        conv2 bias, f32
    o_ref  : (N, Cout, H*W)   output, channels-major (lane-dense stores)
    """
    P = H * W

    # Column index of every flattened spatial position (lane axis), + edge masks.
    col = lax.broadcasted_iota(jnp.int32, (1, P), 1) % W
    m_left = (col > 0).astype(jnp.float32)        # valid when reading column x-1
    m_right = (col < W - 1).astype(jnp.float32)   # valid when reading column x+1

    def shifted_tap(v, dy, dx):
        """tap[c, y*W+x] = v[c, (y+dy-1)*W + (x+dx-1)] with zero 'same' padding."""
        s = (dy - 1) * W + (dx - 1)               # static flat shift
        if s == 0:
            t = v
        elif s > 0:
            fill = jnp.zeros(v.shape[:-1] + (s,), v.dtype)
            t = jnp.concatenate([v[..., s:], fill], axis=-1)
        else:
            fill = jnp.zeros(v.shape[:-1] + (-s,), v.dtype)
            t = jnp.concatenate([fill, v[..., :P + s]], axis=-1)
        # Zero fill already handles out-of-image rows; only the one-column
        # wrap across row boundaries needs masking.
        if dx == 0:
            t = t * m_left.astype(t.dtype)
        elif dx == 2:
            t = t * m_right.astype(t.dtype)
        return t

    def conv3x3_relu(v, w_ref, b_ref, cout):
        """v: (Cin_, P).  9 per-tap accumulating matmuls -> (cout, P), f32."""
        acc = jnp.zeros((cout, P), jnp.float32)
        for t in range(9):
            dy, dx = divmod(t, 3)
            tap = shifted_tap(v, dy, dx)                       # (Cin_, P)
            acc = acc + jnp.dot(w_ref[t], tap,
                                preferred_element_type=jnp.float32)
        return jnp.maximum(acc + b_ref[...], 0.0)

    # Batch folded into this single grid step (N is tiny -> static unroll).
    for n in range(N):
        x = x_ref[n]                                           # (Cin, P) f32
        y1 = conv3x3_relu(x, w1_ref, b1_ref, Cmid)             # f32 conv1
        y2 = conv3x3_relu(y1.astype(jnp.bfloat16),             # bf16 conv2
                          w2_ref, b2_ref, Cout)
        o_ref[n] = y2.astype(o_ref.dtype)                      # lane-dense store


# ----------------------------------------------------------------------------
# Wrapper
# ----------------------------------------------------------------------------
def twocon_forward(x_nchw, params):
    """TwoCon forward.  x_nchw: (N, Cin, H, W) f32; params = (w1, b1, w2, b2)
    with weights in HWIO layout (3, 3, Cin, Cout)."""
    w1, b1, w2, b2 = params
    N, Cin, H, W = x_nchw.shape
    Cmid = w1.shape[-1]
    Cout = w2.shape[-1]
    P = H * W

    # Free reshape (no transpose op): NCHW -> (N, Cin, H*W).
    x2 = x_nchw.reshape(N, Cin, P)
    # Per-tap weight matrices; tap index t = dy*3 + dx.
    w1m = jnp.transpose(w1.reshape(9, Cin, Cmid), (0, 2, 1)).astype(jnp.float32)
    b1m = b1.reshape(Cmid, 1).astype(jnp.float32)
    w2m = jnp.transpose(w2.reshape(9, Cmid, Cout), (0, 2, 1)).astype(jnp.bfloat16)
    b2m = b2.reshape(Cout, 1).astype(jnp.float32)

    kernel = functools.partial(twocon_kernel, N=N, H=H, W=W,
                               Cin=Cin, Cmid=Cmid, Cout=Cout)
    out = pl.pallas_call(
        kernel,
        out_shape=jax.ShapeDtypeStruct((N, Cout, P), jnp.float32),
        # Single step (grid = ()): every operand lives whole in VMEM for the
        # duration of the call -- a few hundred KB, no blocking needed.
        in_specs=[pl.BlockSpec(memory_space=pltpu.MemorySpace.VMEM)
                  for _ in range(5)],
        out_specs=pl.BlockSpec(memory_space=pltpu.MemorySpace.VMEM),
    )(x2, w1m, b1m, w2m, b2m)
    # Free reshape back to NCHW.
    return out.reshape(N, Cout, H, W)


# ----------------------------------------------------------------------------
# Deterministic PyTorch-Conv2d-like init (uniform(-1/sqrt(fan_in), +...))
# ----------------------------------------------------------------------------
def init_twocon_params(key, in_channels, out_channels):
    k1w, k1b, k2w, k2b = jax.random.split(key, 4)
    bound1 = 1.0 / math.sqrt(3 * 3 * in_channels)
    w1 = jax.random.uniform(k1w, (3, 3, in_channels, out_channels),
                            jnp.float32, -bound1, bound1)
    b1 = jax.random.uniform(k1b, (out_channels,), jnp.float32, -bound1, bound1)
    bound2 = 1.0 / math.sqrt(3 * 3 * out_channels)
    w2 = jax.random.uniform(k2w, (3, 3, out_channels, out_channels),
                            jnp.float32, -bound2, bound2)
    b2 = jax.random.uniform(k2b, (out_channels,), jnp.float32, -bound2, bound2)
    return (w1, b1, w2, b2)


# ----------------------------------------------------------------------------
# Pure-JAX reference (f32) for a correctness sanity check
# ----------------------------------------------------------------------------
def twocon_reference(x_nchw, params):
    w1, b1, w2, b2 = params

    def conv_relu(x, w, b):
        y = jax.lax.conv_general_dilated(
            x, w, window_strides=(1, 1), padding="SAME",
            dimension_numbers=("NCHW", "HWIO", "NCHW"))
        return jax.nn.relu(y + b[None, :, None, None])

    return conv_relu(conv_relu(x_nchw, w1, b1), w2, b2)


if __name__ == "__main__":
    key = jax.random.PRNGKey(0)
    pkey, xkey = jax.random.split(key)

    in_channels, out_channels = 4, 32
    N, H, W = 2, 16, 16

    params = init_twocon_params(pkey, in_channels, out_channels)
    x = jax.random.normal(xkey, (N, in_channels, H, W), jnp.float32)

    fwd = jax.jit(twocon_forward)
    out = fwd(x, params)
    jax.block_until_ready(out)

    assert out.shape == (N, out_channels, H, W)
    ref = twocon_reference(x, params)
    # conv2 runs with bf16 MXU inputs vs f32 reference -> loose tolerance.
    assert jnp.allclose(out, ref, atol=3e-2, rtol=3e-2), \
        f"max abs err {float(jnp.max(jnp.abs(out - ref)))}"
    print("KERNEL_OK")
</pallas_src>

<mosaic_0001>
module attributes {stable_mosaic.version = 11 : i64} {
  func.func @twocon_kernel(%arg0: memref<2x4x256xf32, #tpu.memory_space<vmem>>, %arg1: memref<9x32x4xf32, #tpu.memory_space<vmem>>, %arg2: memref<32x1xf32, #tpu.memory_space<vmem>>, %arg3: memref<9x32x32xbf16, #tpu.memory_space<vmem>>, %arg4: memref<32x1xf32, #tpu.memory_space<vmem>>, %arg5: memref<2x32x256xf32, #tpu.memory_space<vmem>>) attributes {dimension_semantics = [], scalar_prefetch = 0 : i64, scratch_operands = 0 : i64, tpu.core_type = #tpu.core_type<tc>} {
    %0 = tpu.iota {dimensions = array<i32: 1>} : vector<1x256xi32>
    %c16_i32 = arith.constant 16 : i32
    %c0_i32 = arith.constant 0 : i32
    %1 = arith.cmpi eq, %c16_i32, %c0_i32 : i32
    %c1_i32 = arith.constant 1 : i32
    %2 = arith.select %1, %c1_i32, %c16_i32 : i32
    %3 = vector.broadcast %2 : i32 to vector<1x256xi32>
    %4 = arith.remsi %0, %3 : vector<1x256xi32>
    %c0_i32_0 = arith.constant 0 : i32
    %5 = vector.broadcast %c0_i32_0 : i32 to vector<1x256xi32>
    %6 = arith.cmpi ne, %4, %5 : vector<1x256xi32>
    %c0_i32_1 = arith.constant 0 : i32
    %7 = vector.broadcast %c0_i32_1 : i32 to vector<1x256xi32>
    %8 = arith.cmpi slt, %4, %7 : vector<1x256xi32>
    %c0_i32_2 = arith.constant 0 : i32
    %9 = arith.cmpi slt, %2, %c0_i32_2 : i32
    %10 = vector.broadcast %9 : i1 to vector<1x256xi1>
    %11 = vector.broadcast %10 : vector<1x256xi1> to vector<1x256xi1>
    %12 = arith.xori %8, %11 : vector<1x256xi1>
    %13 = arith.andi %12, %6 : vector<1x256xi1>
    %14 = vector.broadcast %2 : i32 to vector<1x256xi32>
    %15 = arith.addi %4, %14 : vector<1x256xi32>
    %16 = arith.select %13, %15, %4 : vector<1x256xi1>, vector<1x256xi32>
    %c0_i32_3 = arith.constant 0 : i32
    %17 = vector.broadcast %c0_i32_3 : i32 to vector<1x256xi32>
    %18 = arith.cmpi sgt, %16, %17 : vector<1x256xi32>
    %19 = arith.extui %18 : vector<1x256xi1> to vector<1x256xi32>
    %20 = arith.sitofp %19 : vector<1x256xi32> to vector<1x256xf32>
    %c15_i32 = arith.constant 15 : i32
    %21 = vector.broadcast %c15_i32 : i32 to vector<1x256xi32>
    %22 = arith.cmpi slt, %16, %21 : vector<1x256xi32>
    %23 = arith.extui %22 : vector<1x256xi1> to vector<1x256xi32>
    %24 = arith.sitofp %23 : vector<1x256xi32> to vector<1x256xf32>
    %c0 = arith.constant 0 : index
    %c0_4 = arith.constant 0 : index
    %c0_5 = arith.constant 0 : index
    %25 = vector.load %arg0[%c0, %c0_4, %c0_5] : memref<2x4x256xf32, #tpu.memory_space<vmem>>, vector<1x4x256xf32>
    %26 = vector.shape_cast %25 : vector<1x4x256xf32> to vector<4x256xf32>
    %cst = arith.constant 0.000000e+00 : f32
    %27 = vector.broadcast %cst : f32 to vector<32x256xf32>
    %cst_6 = arith.constant 0.000000e+00 : f32
    %28 = vector.broadcast %cst_6 : f32 to vector<4x17xf32>
    %29 = vector.extract_strided_slice %26 {offsets = [0, 0], sizes = [4, 239], strides = [1, 1]} : vector<4x256xf32> to vector<4x239xf32>
    %30 = tpu.concatenate %28, %29 in 1 : vector<4x17xf32>, vector<4x239xf32> -> vector<4x256xf32>
    %31 = vector.broadcast %20 : vector<1x256xf32> to vector<4x256xf32>
    %32 = arith.mulf %30, %31 : vector<4x256xf32>
    %c0_7 = arith.constant 0 : index
    %c0_8 = arith.constant 0 : index
    %c0_9 = arith.constant 0 : index
    %33 = vector.load %arg1[%c0_7, %c0_8, %c0_9] : memref<9x32x4xf32, #tpu.memory_space<vmem>>, vector<1x32x4xf32>
    %34 = vector.shape_cast %33 : vector<1x32x4xf32> to vector<32x4xf32>
    %cst_10 = arith.constant dense<0.000000e+00> : vector<32x256xf32>
    %35 = tpu.matmul %34, %32, %cst_10 {dimension_numbers = #tpu.dot_dimension_numbers<[1], [0], [0], [1], [0, 0, 1, 1], [], []>} : vector<32x4xf32>, vector<4x256xf32>, vector<32x256xf32> -> vector<32x256xf32>
    %36 = arith.addf %27, %35 : vector<32x256xf32>
    %cst_11 = arith.constant 0.000000e+00 : f32
    %37 = vector.broadcast %cst_11 : f32 to vector<4x16xf32>
    %38 = vector.extract_strided_slice %26 {offsets = [0, 0], sizes = [4, 240], strides = [1, 1]} : vector<4x256xf32> to vector<4x240xf32>
    %39 = tpu.concatenate %37, %38 in 1 : vector<4x16xf32>, vector<4x240xf32> -> vector<4x256xf32>
    %c1 = arith.constant 1 : index
    %c0_12 = arith.constant 0 : index
    %c0_13 = arith.constant 0 : index
    %40 = vector.load %arg1[%c1, %c0_12, %c0_13] : memref<9x32x4xf32, #tpu.memory_space<vmem>>, vector<1x32x4xf32>
    %41 = vector.shape_cast %40 : vector<1x32x4xf32> to vector<32x4xf32>
    %cst_14 = arith.constant dense<0.000000e+00> : vector<32x256xf32>
    %42 = tpu.matmul %41, %39, %cst_14 {dimension_numbers = #tpu.dot_dimension_numbers<[1], [0], [0], [1], [0, 0, 1, 1], [], []>} : vector<32x4xf32>, vector<4x256xf32>, vector<32x256xf32> -> vector<32x256xf32>
    %43 = arith.addf %36, %42 : vector<32x256xf32>
    %cst_15 = arith.constant 0.000000e+00 : f32
    %44 = vector.broadcast %cst_15 : f32 to vector<4x15xf32>
    %45 = vector.extract_strided_slice %26 {offsets = [0, 0], sizes = [4, 241], strides = [1, 1]} : vector<4x256xf32> to vector<4x241xf32>
    %46 = tpu.concatenate %44, %45 in 1 : vector<4x15xf32>, vector<4x241xf32> -> vector<4x256xf32>
    %47 = vector.broadcast %24 : vector<1x256xf32> to vector<4x256xf32>
    %48 = arith.mulf %46, %47 : vector<4x256xf32>
    %c2 = arith.constant 2 : index
    %c0_16 = arith.constant 0 : index
    %c0_17 = arith.constant 0 : index
    %49 = vector.load %arg1[%c2, %c0_16, %c0_17] : memref<9x32x4xf32, #tpu.memory_space<vmem>>, vector<1x32x4xf32>
    %50 = vector.shape_cast %49 : vector<1x32x4xf32> to vector<32x4xf32>
    %cst_18 = arith.constant dense<0.000000e+00> : vector<32x256xf32>
    %51 = tpu.matmul %50, %48, %cst_18 {dimension_numbers = #tpu.dot_dimension_numbers<[1], [0], [0], [1], [0, 0, 1, 1], [], []>} : vector<32x4xf32>, vector<4x256xf32>, vector<32x256xf32> -> vector<32x256xf32>
    %52 = arith.addf %43, %51 : vector<32x256xf32>
    %cst_19 = arith.constant 0.000000e+00 : f32
    %53 = vector.broadcast %cst_19 : f32 to vector<4x1xf32>
    %54 = vector.extract_strided_slice %26 {offsets = [0, 0], sizes = [4, 255], strides = [1, 1]} : vector<4x256xf32> to vector<4x255xf32>
    %55 = tpu.concatenate %53, %54 in 1 : vector<4x1xf32>, vector<4x255xf32> -> vector<4x256xf32>
    %56 = vector.broadcast %20 : vector<1x256xf32> to vector<4x256xf32>
    %57 = arith.mulf %55, %56 : vector<4x256xf32>
    %c3 = arith.constant 3 : index
    %c0_20 = arith.constant 0 : index
    %c0_21 = arith.constant 0 : index
    %58 = vector.load %arg1[%c3, %c0_20, %c0_21] : memref<9x32x4xf32, #tpu.memory_space<vmem>>, vector<1x32x4xf32>
    %59 = vector.shape_cast %58 : vector<1x32x4xf32> to vector<32x4xf32>
    %cst_22 = arith.constant dense<0.000000e+00> : vector<32x256xf32>
    %60 = tpu.matmul %59, %57, %cst_22 {dimension_numbers = #tpu.dot_dimension_numbers<[1], [0], [0], [1], [0, 0, 1, 1], [], []>} : vector<32x4xf32>, vector<4x256xf32>, vector<32x256xf32> -> vector<32x256xf32>
    %61 = arith.addf %52, %60 : vector<32x256xf32>
    %c4 = arith.constant 4 : index
    %c0_23 = arith.constant 0 : index
    %c0_24 = arith.constant 0 : index
    %62 = vector.load %arg1[%c4, %c0_23, %c0_24] : memref<9x32x4xf32, #tpu.memory_space<vmem>>, vector<1x32x4xf32>
    %63 = vector.shape_cast %62 : vector<1x32x4xf32> to vector<32x4xf32>
    %cst_25 = arith.constant dense<0.000000e+00> : vector<32x256xf32>
    %64 = tpu.matmul %63, %26, %cst_25 {dimension_numbers = #tpu.dot_dimension_numbers<[1], [0], [0], [1], [0, 0, 1, 1], [], []>} : vector<32x4xf32>, vector<4x256xf32>, vector<32x256xf32> -> vector<32x256xf32>
    %65 = arith.addf %61, %64 : vector<32x256xf32>
    %cst_26 = arith.constant 0.000000e+00 : f32
    %66 = vector.broadcast %cst_26 : f32 to vector<4x1xf32>
    %67 = vector.extract_strided_slice %26 {offsets = [0, 1], sizes = [4, 255], strides = [1, 1]} : vector<4x256xf32> to vector<4x255xf32>
    %68 = tpu.concatenate %67, %66 in 1 : vector<4x255xf32>, vector<4x1xf32> -> vector<4x256xf32>
    %69 = vector.broadcast %24 : vector<1x256xf32> to vector<4x256xf32>
    %70 = arith.mulf %68, %69 : vector<4x256xf32>
    %c5 = arith.constant 5 : index
    %c0_27 = arith.constant 0 : index
    %c0_28 = arith.constant 0 : index
    %71 = vector.load %arg1[%c5, %c0_27, %c0_28] : memref<9x32x4xf32, #tpu.memory_space<vmem>>, vector<1x32x4xf32>
    %72 = vector.shape_cast %71 : vector<1x32x4xf32> to vector<32x4xf32>
    %cst_29 = arith.constant dense<0.000000e+00> : vector<32x256xf32>
    %73 = tpu.matmul %72, %70, %cst_29 {dimension_numbers = #tpu.dot_dimension_numbers<[1], [0], [0], [1], [0, 0, 1, 1], [], []>} : vector<32x4xf32>, vector<4x256xf32>, vector<32x256xf32> -> vector<32x256xf32>
    %74 = arith.addf %65, %73 : vector<32x256xf32>
    %cst_30 = arith.constant 0.000000e+00 : f32
    %75 = vector.broadcast %cst_30 : f32 to vector<4x15xf32>
    %76 = vector.extract_strided_slice %26 {offsets = [0, 15], sizes = [4, 241], strides = [1, 1]} : vector<4x256xf32> to vector<4x241xf32>
    %77 = tpu.concatenate %76, %75 in 1 : vector<4x241xf32>, vector<4x15xf32> -> vector<4x256xf32>
    %78 = vector.broadcast %20 : vector<1x256xf32> to vector<4x256xf32>
    %79 = arith.mulf %77, %78 : vector<4x256xf32>
    %c6 = arith.constant 6 : index
    %c0_31 = arith.constant 0 : index
    %c0_32 = arith.constant 0 : index
    %80 = vector.load %arg1[%c6, %c0_31, %c0_32] : memref<9x32x4xf32, #tpu.memory_space<vmem>>, vector<1x32x4xf32>
    %81 = vector.shape_cast %80 : vector<1x32x4xf32> to vector<32x4xf32>
    %cst_33 = arith.constant dense<0.000000e+00> : vector<32x256xf32>
    %82 = tpu.matmul %81, %79, %cst_33 {dimension_numbers = #tpu.dot_dimension_numbers<[1], [0], [0], [1], [0, 0, 1, 1], [], []>} : vector<32x4xf32>, vector<4x256xf32>, vector<32x256xf32> -> vector<32x256xf32>
    %83 = arith.addf %74, %82 : vector<32x256xf32>
    %cst_34 = arith.constant 0.000000e+00 : f32
    %84 = vector.broadcast %cst_34 : f32 to vector<4x16xf32>
    %85 = vector.extract_strided_slice %26 {offsets = [0, 16], sizes = [4, 240], strides = [1, 1]} : vector<4x256xf32> to vector<4x240xf32>
    %86 = tpu.concatenate %85, %84 in 1 : vector<4x240xf32>, vector<4x16xf32> -> vector<4x256xf32>
    %c7 = arith.constant 7 : index
    %c0_35 = arith.constant 0 : index
    %c0_36 = arith.constant 0 : index
    %87 = vector.load %arg1[%c7, %c0_35, %c0_36] : memref<9x32x4xf32, #tpu.memory_space<vmem>>, vector<1x32x4xf32>
    %88 = vector.shape_cast %87 : vector<1x32x4xf32> to vector<32x4xf32>
    %cst_37 = arith.constant dense<0.000000e+00> : vector<32x256xf32>
    %89 = tpu.matmul %88, %86, %cst_37 {dimension_numbers = #tpu.dot_dimension_numbers<[1], [0], [0], [1], [0, 0, 1, 1], [], []>} : vector<32x4xf32>, vector<4x256xf32>, vector<32x256xf32> -> vector<32x256xf32>
    %90 = arith.addf %83, %89 : vector<32x256xf32>
    %cst_38 = arith.constant 0.000000e+00 : f32
    %91 = vector.broadcast %cst_38 : f32 to vector<4x17xf32>
    %92 = vector.extract_strided_slice %26 {offsets = [0, 17], sizes = [4, 239], strides = [1, 1]} : vector<4x256xf32> to vector<4x239xf32>
    %93 = tpu.concatenate %92, %91 in 1 : vector<4x239xf32>, vector<4x17xf32> -> vector<4x256xf32>
    %94 = vector.broadcast %24 : vector<1x256xf32> to vector<4x256xf32>
    %95 = arith.mulf %93, %94 : vector<4x256xf32>
    %c8 = arith.constant 8 : index
    %c0_39 = arith.constant 0 : index
    %c0_40 = arith.constant 0 : index
    %96 = vector.load %arg1[%c8, %c0_39, %c0_40] : memref<9x32x4xf32, #tpu.memory_space<vmem>>, vector<1x32x4xf32>
    %97 = vector.shape_cast %96 : vector<1x32x4xf32> to vector<32x4xf32>
    %cst_41 = arith.constant dense<0.000000e+00> : vector<32x256xf32>
    %98 = tpu.matmul %97, %95, %cst_41 {dimension_numbers = #tpu.dot_dimension_numbers<[1], [0], [0], [1], [0, 0, 1, 1], [], []>} : vector<32x4xf32>, vector<4x256xf32>, vector<32x256xf32> -> vector<32x256xf32>
    %99 = arith.addf %90, %98 : vector<32x256xf32>
    %c0_42 = arith.constant 0 : index
    %c0_43 = arith.constant 0 : index
    %100 = vector.load %arg2[%c0_42, %c0_43] : memref<32x1xf32, #tpu.memory_space<vmem>>, vector<32x1xf32>
    %101 = vector.broadcast %100 : vector<32x1xf32> to vector<32x256xf32>
    %102 = arith.addf %99, %101 : vector<32x256xf32>
    %cst_44 = arith.constant 0.000000e+00 : f32
    %103 = vector.broadcast %cst_44 : f32 to vector<32x256xf32>
    %104 = arith.maximumf %102, %103 : vector<32x256xf32>
    %105 = arith.truncf %104 : vector<32x256xf32> to vector<32x256xbf16>
    %cst_45 = arith.constant 0.000000e+00 : f32
    %106 = vector.broadcast %cst_45 : f32 to vector<32x256xf32>
    %cst_46 = arith.constant 0.000000e+00 : bf16
    %107 = vector.broadcast %cst_46 : bf16 to vector<32x17xbf16>
    %108 = vector.extract_strided_slice %105 {offsets = [0, 0], sizes = [32, 239], strides = [1, 1]} : vector<32x256xbf16> to vector<32x239xbf16>
    %109 = tpu.concatenate %107, %108 in 1 : vector<32x17xbf16>, vector<32x239xbf16> -> vector<32x256xbf16>
    %110 = arith.truncf %20 : vector<1x256xf32> to vector<1x256xbf16>
    %111 = vector.broadcast %110 : vector<1x256xbf16> to vector<32x256xbf16>
    %112 = arith.mulf %109, %111 : vector<32x256xbf16>
    %c0_47 = arith.constant 0 : index
    %c0_48 = arith.constant 0 : index
    %c0_49 = arith.constant 0 : index
    %113 = vector.load %arg3[%c0_47, %c0_48, %c0_49] : memref<9x32x32xbf16, #tpu.memory_space<vmem>>, vector<1x32x32xbf16>
    %114 = vector.shape_cast %113 : vector<1x32x32xbf16> to vector<32x32xbf16>
    %cst_50 = arith.constant dense<0.000000e+00> : vector<32x256xf32>
    %115 = tpu.matmul %114, %112, %cst_50 {dimension_numbers = #tpu.dot_dimension_numbers<[1], [0], [0], [1], [0, 0, 1, 1], [], []>} : vector<32x32xbf16>, vector<32x256xbf16>, vector<32x256xf32> -> vector<32x256xf32>
    %116 = arith.addf %106, %115 : vector<32x256xf32>
    %cst_51 = arith.constant 0.000000e+00 : bf16
    %117 = vector.broadcast %cst_51 : bf16 to vector<32x16xbf16>
    %118 = vector.extract_strided_slice %105 {offsets = [0, 0], sizes = [32, 240], strides = [1, 1]} : vector<32x256xbf16> to vector<32x240xbf16>
    %119 = tpu.concatenate %117, %118 in 1 : vector<32x16xbf16>, vector<32x240xbf16> -> vector<32x256xbf16>
    %c1_52 = arith.constant 1 : index
    %c0_53 = arith.constant 0 : index
    %c0_54 = arith.constant 0 : index
    %120 = vector.load %arg3[%c1_52, %c0_53, %c0_54] : memref<9x32x32xbf16, #tpu.memory_space<vmem>>, vector<1x32x32xbf16>
    %121 = vector.shape_cast %120 : vector<1x32x32xbf16> to vector<32x32xbf16>
    %cst_55 = arith.constant dense<0.000000e+00> : vector<32x256xf32>
    %122 = tpu.matmul %121, %119, %cst_55 {dimension_numbers = #tpu.dot_dimension_numbers<[1], [0], [0], [1], [0, 0, 1, 1], [], []>} : vector<32x32xbf16>, vector<32x256xbf16>, vector<32x256xf32> -> vector<32x256xf32>
    %123 = arith.addf %116, %122 : vector<32x256xf32>
    %cst_56 = arith.constant 0.000000e+00 : bf16
    %124 = vector.broadcast %cst_56 : bf16 to vector<32x15xbf16>
    %125 = vector.extract_strided_slice %105 {offsets = [0, 0], sizes = [32, 241], strides = [1, 1]} : vector<32x256xbf16> to vector<32x241xbf16>
    %126 = tpu.concatenate %124, %125 in 1 : vector<32x15xbf16>, vector<32x241xbf16> -> vector<32x256xbf16>
    %127 = arith.truncf %24 : vector<1x256xf32> to vector<1x256xbf16>
    %128 = vector.broadcast %127 : vector<1x256xbf16> to vector<32x256xbf16>
    %129 = arith.mulf %126, %128 : vector<32x256xbf16>
    %c2_57 = arith.constant 2 : index
    %c0_58 = arith.constant 0 : index
    %c0_59 = arith.constant 0 : index
    %130 = vector.load %arg3[%c2_57, %c0_58, %c0_59] : memref<9x32x32xbf16, #tpu.memory_space<vmem>>, vector<1x32x32xbf16>
    %131 = vector.shape_cast %130 : vector<1x32x32xbf16> to vector<32x32xbf16>
    %cst_60 = arith.constant dense<0.000000e+00> : vector<32x256xf32>
    %132 = tpu.matmul %131, %129, %cst_60 {dimension_numbers = #tpu.dot_dimension_numbers<[1], [0], [0], [1], [0, 0, 1, 1], [], []>} : vector<32x32xbf16>, vector<32x256xbf16>, vector<32x256xf32> -> vector<32x256xf32>
    %133 = arith.addf %123, %132 : vector<32x256xf32>
    %cst_61 = arith.constant 0.000000e+00 : bf16
    %134 = vector.broadcast %cst_61 : bf16 to vector<32x1xbf16>
    %135 = vector.extract_strided_slice %105 {offsets = [0, 0], sizes = [32, 255], strides = [1, 1]} : vector<32x256xbf16> to vector<32x255xbf16>
    %136 = tpu.concatenate %134, %135 in 1 : vector<32x1xbf16>, vector<32x255xbf16> -> vector<32x256xbf16>
    %137 = arith.truncf %20 : vector<1x256xf32> to vector<1x256xbf16>
    %138 = vector.broadcast %137 : vector<1x256xbf16> to vector<32x256xbf16>
    %139 = arith.mulf %136, %138 : vector<32x256xbf16>
    %c3_62 = arith.constant 3 : index
    %c0_63 = arith.constant 0 : index
    %c0_64 = arith.constant 0 : index
    %140 = vector.load %arg3[%c3_62, %c0_63, %c0_64] : memref<9x32x32xbf16, #tpu.memory_space<vmem>>, vector<1x32x32xbf16>
    %141 = vector.shape_cast %140 : vector<1x32x32xbf16> to vector<32x32xbf16>
    %cst_65 = arith.constant dense<0.000000e+00> : vector<32x256xf32>
    %142 = tpu.matmul %141, %139, %cst_65 {dimension_numbers = #tpu.dot_dimension_numbers<[1], [0], [0], [1], [0, 0, 1, 1], [], []>} : vector<32x32xbf16>, vector<32x256xbf16>, vector<32x256xf32> -> vector<32x256xf32>
    %143 = arith.addf %133, %142 : vector<32x256xf32>
    %c4_66 = arith.constant 4 : index
    %c0_67 = arith.constant 0 : index
    %c0_68 = arith.constant 0 : index
    %144 = vector.load %arg3[%c4_66, %c0_67, %c0_68] : memref<9x32x32xbf16, #tpu.memory_space<vmem>>, vector<1x32x32xbf16>
    %145 = vector.shape_cast %144 : vector<1x32x32xbf16> to vector<32x32xbf16>
    %cst_69 = arith.constant dense<0.000000e+00> : vector<32x256xf32>
    %146 = tpu.matmul %145, %105, %cst_69 {dimension_numbers = #tpu.dot_dimension_numbers<[1], [0], [0], [1], [0, 0, 1, 1], [], []>} : vector<32x32xbf16>, vector<32x256xbf16>, vector<32x256xf32> -> vector<32x256xf32>
    %147 = arith.addf %143, %146 : vector<32x256xf32>
    %cst_70 = arith.constant 0.000000e+00 : bf16
    %148 = vector.broadcast %cst_70 : bf16 to vector<32x1xbf16>
    %149 = vector.extract_strided_slice %105 {offsets = [0, 1], sizes = [32, 255], strides = [1, 1]} : vector<32x256xbf16> to vector<32x255xbf16>
    %150 = tpu.concatenate %149, %148 in 1 : vector<32x255xbf16>, vector<32x1xbf16> -> vector<32x256xbf16>
    %151 = arith.truncf %24 : vector<1x256xf32> to vector<1x256xbf16>
    %152 = vector.broadcast %151 : vector<1x256xbf16> to vector<32x256xbf16>
    %153 = arith.mulf %150, %152 : vector<32x256xbf16>
    %c5_71 = arith.constant 5 : index
    %c0_72 = arith.constant 0 : index
    %c0_73 = arith.constant 0 : index
    %154 = vector.load %arg3[%c5_71, %c0_72, %c0_73] : memref<9x32x32xbf16, #tpu.memory_space<vmem>>, vector<1x32x32xbf16>
    %155 = vector.shape_cast %154 : vector<1x32x32xbf16> to vector<32x32xbf16>
    %cst_74 = arith.constant dense<0.000000e+00> : vector<32x256xf32>
    %156 = tpu.matmul %155, %153, %cst_74 {dimension_numbers = #tpu.dot_dimension_numbers<[1], [0], [0], [1], [0, 0, 1, 1], [], []>} : vector<32x32xbf16>, vector<32x256xbf16>, vector<32x256xf32> -> vector<32x256xf32>
    %157 = arith.addf %147, %156 : vector<32x256xf32>
    %cst_75 = arith.constant 0.000000e+00 : bf16
    %158 = vector.broadcast %cst_75 : bf16 to vector<32x15xbf16>
    %159 = vector.extract_strided_slice %105 {offsets = [0, 15], sizes = [32, 241], strides = [1, 1]} : vector<32x256xbf16> to vector<32x241xbf16>
    %160 = tpu.concatenate %159, %158 in 1 : vector<32x241xbf16>, vector<32x15xbf16> -> vector<32x256xbf16>
    %161 = arith.truncf %20 : vector<1x256xf32> to vector<1x256xbf16>
    %162 = vector.broadcast %161 : vector<1x256xbf16> to vector<32x256xbf16>
    %163 = arith.mulf %160, %162 : vector<32x256xbf16>
    %c6_76 = arith.constant 6 : index
    %c0_77 = arith.constant 0 : index
    %c0_78 = arith.constant 0 : index
    %164 = vector.load %arg3[%c6_76, %c0_77, %c0_78] : memref<9x32x32xbf16, #tpu.memory_space<vmem>>, vector<1x32x32xbf16>
    %165 = vector.shape_cast %164 : vector<1x32x32xbf16> to vector<32x32xbf16>
    %cst_79 = arith.constant dense<0.000000e+00> : vector<32x256xf32>
    %166 = tpu.matmul %165, %163, %cst_79 {dimension_numbers = #tpu.dot_dimension_numbers<[1], [0], [0], [1], [0, 0, 1, 1], [], []>} : vector<32x32xbf16>, vector<32x256xbf16>, vector<32x256xf32> -> vector<32x256xf32>
    %167 = arith.addf %157, %166 : vector<32x256xf32>
    %cst_80 = arith.constant 0.000000e+00 : bf16
    %168 = vector.broadcast %cst_80 : bf16 to vector<32x16xbf16>
    %169 = vector.extract_strided_slice %105 {offsets = [0, 16], sizes = [32, 240], strides = [1, 1]} : vector<32x256xbf16> to vector<32x240xbf16>
    %170 = tpu.concatenate %169, %168 in 1 : vector<32x240xbf16>, vector<32x16xbf16> -> vector<32x256xbf16>
    %c7_81 = arith.constant 7 : index
    %c0_82 = arith.constant 0 : index
    %c0_83 = arith.constant 0 : index
    %171 = vector.load %arg3[%c7_81, %c0_82, %c0_83] : memref<9x32x32xbf16, #tpu.memory_space<vmem>>, vector<1x32x32xbf16>
    %172 = vector.shape_cast %171 : vector<1x32x32xbf16> to vector<32x32xbf16>
    %cst_84 = arith.constant dense<0.000000e+00> : vector<32x256xf32>
    %173 = tpu.matmul %172, %170, %cst_84 {dimension_numbers = #tpu.dot_dimension_numbers<[1], [0], [0], [1], [0, 0, 1, 1], [], []>} : vector<32x32xbf16>, vector<32x256xbf16>, vector<32x256xf32> -> vector<32x256xf32>
    %174 = arith.addf %167, %173 : vector<32x256xf32>
    %cst_85 = arith.constant 0.000000e+00 : bf16
    %175 = vector.broadcast %cst_85 : bf16 to vector<32x17xbf16>
    %176 = vector.extract_strided_slice %105 {offsets = [0, 17], sizes = [32, 239], strides = [1, 1]} : vector<32x256xbf16> to vector<32x239xbf16>
    %177 = tpu.concatenate %176, %175 in 1 : vector<32x239xbf16>, vector<32x17xbf16> -> vector<32x256xbf16>
    %178 = arith.truncf %24 : vector<1x256xf32> to vector<1x256xbf16>
    %179 = vector.broadcast %178 : vector<1x256xbf16> to vector<32x256xbf16>
    %180 = arith.mulf %177, %179 : vector<32x256xbf16>
    %c8_86 = arith.constant 8 : index
    %c0_87 = arith.constant 0 : index
    %c0_88 = arith.constant 0 : index
    %181 = vector.load %arg3[%c8_86, %c0_87, %c0_88] : memref<9x32x32xbf16, #tpu.memory_space<vmem>>, vector<1x32x32xbf16>
    %182 = vector.shape_cast %181 : vector<1x32x32xbf16> to vector<32x32xbf16>
    %cst_89 = arith.constant dense<0.000000e+00> : vector<32x256xf32>
    %183 = tpu.matmul %182, %180, %cst_89 {dimension_numbers = #tpu.dot_dimension_numbers<[1], [0], [0], [1], [0, 0, 1, 1], [], []>} : vector<32x32xbf16>, vector<32x256xbf16>, vector<32x256xf32> -> vector<32x256xf32>
    %184 = arith.addf %174, %183 : vector<32x256xf32>
    %c0_90 = arith.constant 0 : index
    %c0_91 = arith.constant 0 : index
    %185 = vector.load %arg4[%c0_90, %c0_91] : memref<32x1xf32, #tpu.memory_space<vmem>>, vector<32x1xf32>
    %186 = vector.broadcast %185 : vector<32x1xf32> to vector<32x256xf32>
    %187 = arith.addf %184, %186 : vector<32x256xf32>
    %cst_92 = arith.constant 0.000000e+00 : f32
    %188 = vector.broadcast %cst_92 : f32 to vector<32x256xf32>
    %189 = arith.maximumf %187, %188 : vector<32x256xf32>
    %c0_93 = arith.constant 0 : index
    %c0_94 = arith.constant 0 : index
    %c0_95 = arith.constant 0 : index
    %190 = vector.load %arg5[%c0_93, %c0_94, %c0_95] : memref<2x32x256xf32, #tpu.memory_space<vmem>>, vector<1x32x256xf32>
    %191 = vector.shape_cast %190 : vector<1x32x256xf32> to vector<32x256xf32>
    %192 = vector.shape_cast %189 : vector<32x256xf32> to vector<1x32x256xf32>
    tpu.vector_store %arg5[%c0_93, %c0_94, %c0_95], %192 {strides = array<i32>} : memref<2x32x256xf32, #tpu.memory_space<vmem>>, vector<1x32x256xf32>,
    %c1_96 = arith.constant 1 : index
    %c0_97 = arith.constant 0 : index
    %c0_98 = arith.constant 0 : index
    %193 = vector.load %arg0[%c1_96, %c0_97, %c0_98] : memref<2x4x256xf32, #tpu.memory_space<vmem>>, vector<1x4x256xf32>
    %194 = vector.shape_cast %193 : vector<1x4x256xf32> to vector<4x256xf32>
    %cst_99 = arith.constant 0.000000e+00 : f32
    %195 = vector.broadcast %cst_99 : f32 to vector<32x256xf32>
    %cst_100 = arith.constant 0.000000e+00 : f32
    %196 = vector.broadcast %cst_100 : f32 to vector<4x17xf32>
    %197 = vector.extract_strided_slice %194 {offsets = [0, 0], sizes = [4, 239], strides = [1, 1]} : vector<4x256xf32> to vector<4x239xf32>
    %198 = tpu.concatenate %196, %197 in 1 : vector<4x17xf32>, vector<4x239xf32> -> vector<4x256xf32>
    %199 = vector.broadcast %20 : vector<1x256xf32> to vector<4x256xf32>
    %200 = arith.mulf %198, %199 : vector<4x256xf32>
    %c0_101 = arith.constant 0 : index
    %c0_102 = arith.constant 0 : index
    %c0_103 = arith.constant 0 : index
    %201 = vector.load %arg1[%c0_101, %c0_102, %c0_103] : memref<9x32x4xf32, #tpu.memory_space<vmem>>, vector<1x32x4xf32>
    %202 = vector.shape_cast %201 : vector<1x32x4xf32> to vector<32x4xf32>
    %cst_104 = arith.constant dense<0.000000e+00> : vector<32x256xf32>
    %203 = tpu.matmul %202, %200, %cst_104 {dimension_numbers = #tpu.dot_dimension_numbers<[1], [0], [0], [1], [0, 0, 1, 1], [], []>} : vector<32x4xf32>, vector<4x256xf32>, vector<32x256xf32> -> vector<32x256xf32>
    %204 = arith.addf %195, %203 : vector<32x256xf32>
    %cst_105 = arith.constant 0.000000e+00 : f32
    %205 = vector.broadcast %cst_105 : f32 to vector<4x16xf32>
    %206 = vector.extract_strided_slice %194 {offsets = [0, 0], sizes = [4, 240], strides = [1, 1]} : vector<4x256xf32> to vector<4x240xf32>
    %207 = tpu.concatenate %205, %206 in 1 : vector<4x16xf32>, vector<4x240xf32> -> vector<4x256xf32>
    %c1_106 = arith.constant 1 : index
    %c0_107 = arith.constant 0 : index
    %c0_108 = arith.constant 0 : index
    %208 = vector.load %arg1[%c1_106, %c0_107, %c0_108] : memref<9x32x4xf32, #tpu.memory_space<vmem>>, vector<1x32x4xf32>
    %209 = vector.shape_cast %208 : vector<1x32x4xf32> to vector<32x4xf32>
    %cst_109 = arith.constant dense<0.000000e+00> : vector<32x256xf32>
    %210 = tpu.matmul %209, %207, %cst_109 {dimension_numbers = #tpu.dot_dimension_numbers<[1], [0], [0], [1], [0, 0, 1, 1], [], []>} : vector<32x4xf32>, vector<4x256xf32>, vector<32x256xf32> -> vector<32x256xf32>
    %211 = arith.addf %204, %210 : vector<32x256xf32>
    %cst_110 = arith.constant 0.000000e+00 : f32
    %212 = vector.broadcast %cst_110 : f32 to vector<4x15xf32>
    %213 = vector.extract_strided_slice %194 {offsets = [0, 0], sizes = [4, 241], strides = [1, 1]} : vector<4x256xf32> to vector<4x241xf32>
    %214 = tpu.concatenate %212, %213 in 1 : vector<4x15xf32>, vector<4x241xf32> -> vector<4x256xf32>
    %215 = vector.broadcast %24 : vector<1x256xf32> to vector<4x256xf32>
    %216 = arith.mulf %214, %215 : vector<4x256xf32>
    %c2_111 = arith.constant 2 : index
    %c0_112 = arith.constant 0 : index
    %c0_113 = arith.constant 0 : index
    %217 = vector.load %arg1[%c2_111, %c0_112, %c0_113] : memref<9x32x4xf32, #tpu.memory_space<vmem>>, vector<1x32x4xf32>
    %218 = vector.shape_cast %217 : vector<1x32x4xf32> to vector<32x4xf32>
    %cst_114 = arith.constant dense<0.000000e+00> : vector<32x256xf32>
    %219 = tpu.matmul %218, %216, %cst_114 {dimension_numbers = #tpu.dot_dimension_numbers<[1], [0], [0], [1], [0, 0, 1, 1], [], []>} : vector<32x4xf32>, vector<4x256xf32>, vector<32x256xf32> -> vector<32x256xf32>
    %220 = arith.addf %211, %219 : vector<32x256xf32>
    %cst_115 = arith.constant 0.000000e+00 : f32
    %221 = vector.broadcast %cst_115 : f32 to vector<4x1xf32>
    %222 = vector.extract_strided_slice %194 {offsets = [0, 0], sizes = [4, 255], strides = [1, 1]} : vector<4x256xf32> to vector<4x255xf32>
    %223 = tpu.concatenate %221, %222 in 1 : vector<4x1xf32>, vector<4x255xf32> -> vector<4x256xf32>
    %224 = vector.broadcast %20 : vector<1x256xf32> to vector<4x256xf32>
    %225 = arith.mulf %223, %224 : vector<4x256xf32>
    %c3_116 = arith.constant 3 : index
    %c0_117 = arith.constant 0 : index
    %c0_118 = arith.constant 0 : index
    %226 = vector.load %arg1[%c3_116, %c0_117, %c0_118] : memref<9x32x4xf32, #tpu.memory_space<vmem>>, vector<1x32x4xf32>
    %227 = vector.shape_cast %226 : vector<1x32x4xf32> to vector<32x4xf32>
    %cst_119 = arith.constant dense<0.000000e+00> : vector<32x256xf32>
    %228 = tpu.matmul %227, %225, %cst_119 {dimension_numbers = #tpu.dot_dimension_numbers<[1], [0], [0], [1], [0, 0, 1, 1], [], []>} : vector<32x4xf32>, vector<4x256xf32>, vector<32x256xf32> -> vector<32x256xf32>
    %229 = arith.addf %220, %228 : vector<32x256xf32>
    %c4_120 = arith.constant 4 : index
    %c0_121 = arith.constant 0 : index
    %c0_122 = arith.constant 0 : index
    %230 = vector.load %arg1[%c4_120, %c0_121, %c0_122] : memref<9x32x4xf32, #tpu.memory_space<vmem>>, vector<1x32x4xf32>
    %231 = vector.shape_cast %230 : vector<1x32x4xf32> to vector<32x4xf32>
    %cst_123 = arith.constant dense<0.000000e+00> : vector<32x256xf32>
    %232 = tpu.matmul %231, %194, %cst_123 {dimension_numbers = #tpu.dot_dimension_numbers<[1], [0], [0], [1], [0, 0, 1, 1], [], []>} : vector<32x4xf32>, vector<4x256xf32>, vector<32x256xf32> -> vector<32x256xf32>
    %233 = arith.addf %229, %232 : vector<32x256xf32>
    %cst_124 = arith.constant 0.000000e+00 : f32
    %234 = vector.broadcast %cst_124 : f32 to vector<4x1xf32>
    %235 = vector.extract_strided_slice %194 {offsets = [0, 1], sizes = [4, 255], strides = [1, 1]} : vector<4x256xf32> to vector<4x255xf32>
    %236 = tpu.concatenate %235, %234 in 1 : vector<4x255xf32>, vector<4x1xf32> -> vector<4x256xf32>
    %237 = vector.broadcast %24 : vector<1x256xf32> to vector<4x256xf32>
    %238 = arith.mulf %236, %237 : vector<4x256xf32>
    %c5_125 = arith.constant 5 : index
    %c0_126 = arith.constant 0 : index
    %c0_127 = arith.constant 0 : index
    %239 = vector.load %arg1[%c5_125, %c0_126, %c0_127] : memref<9x32x4xf32, #tpu.memory_space<vmem>>, vector<1x32x4xf32>
    %240 = vector.shape_cast %239 : vector<1x32x4xf32> to vector<32x4xf32>
    %cst_128 = arith.constant dense<0.000000e+00> : vector<32x256xf32>
    %241 = tpu.matmul %240, %238, %cst_128 {dimension_numbers = #tpu.dot_dimension_numbers<[1], [0], [0], [1], [0, 0, 1, 1], [], []>} : vector<32x4xf32>, vector<4x256xf32>, vector<32x256xf32> -> vector<32x256xf32>
    %242 = arith.addf %233, %241 : vector<32x256xf32>
    %cst_129 = arith.constant 0.000000e+00 : f32
    %243 = vector.broadcast %cst_129 : f32 to vector<4x15xf32>
    %244 = vector.extract_strided_slice %194 {offsets = [0, 15], sizes = [4, 241], strides = [1, 1]} : vector<4x256xf32> to vector<4x241xf32>
    %245 = tpu.concatenate %244, %243 in 1 : vector<4x241xf32>, vector<4x15xf32> -> vector<4x256xf32>
    %246 = vector.broadcast %20 : vector<1x256xf32> to vector<4x256xf32>
    %247 = arith.mulf %245, %246 : vector<4x256xf32>
    %c6_130 = arith.constant 6 : index
    %c0_131 = arith.constant 0 : index
    %c0_132 = arith.constant 0 : index
    %248 = vector.load %arg1[%c6_130, %c0_131, %c0_132] : memref<9x32x4xf32, #tpu.memory_space<vmem>>, vector<1x32x4xf32>
    %249 = vector.shape_cast %248 : vector<1x32x4xf32> to vector<32x4xf32>
    %cst_133 = arith.constant dense<0.000000e+00> : vector<32x256xf32>
    %250 = tpu.matmul %249, %247, %cst_133 {dimension_numbers = #tpu.dot_dimension_numbers<[1], [0], [0], [1], [0, 0, 1, 1], [], []>} : vector<32x4xf32>, vector<4x256xf32>, vector<32x256xf32> -> vector<32x256xf32>
    %251 = arith.addf %242, %250 : vector<32x256xf32>
    %cst_134 = arith.constant 0.000000e+00 : f32
    %252 = vector.broadcast %cst_134 : f32 to vector<4x16xf32>
    %253 = vector.extract_strided_slice %194 {offsets = [0, 16], sizes = [4, 240], strides = [1, 1]} : vector<4x256xf32> to vector<4x240xf32>
    %254 = tpu.concatenate %253, %252 in 1 : vector<4x240xf32>, vector<4x16xf32> -> vector<4x256xf32>
    %c7_135 = arith.constant 7 : index
    %c0_136 = arith.constant 0 : index
    %c0_137 = arith.constant 0 : index
    %255 = vector.load %arg1[%c7_135, %c0_136, %c0_137] : memref<9x32x4xf32, #tpu.memory_space<vmem>>, vector<1x32x4xf32>
    %256 = vector.shape_cast %255 : vector<1x32x4xf32> to vector<32x4xf32>
    %cst_138 = arith.constant dense<0.000000e+00> : vector<32x256xf32>
    %257 = tpu.matmul %256, %254, %cst_138 {dimension_numbers = #tpu.dot_dimension_numbers<[1], [0], [0], [1], [0, 0, 1, 1], [], []>} : vector<32x4xf32>, vector<4x256xf32>, vector<32x256xf32> -> vector<32x256xf32>
    %258 = arith.addf %251, %257 : vector<32x256xf32>
    %cst_139 = arith.constant 0.000000e+00 : f32
    %259 = vector.broadcast %cst_139 : f32 to vector<4x17xf32>
    %260 = vector.extract_strided_slice %194 {offsets = [0, 17], sizes = [4, 239], strides = [1, 1]} : vector<4x256xf32> to vector<4x239xf32>
    %261 = tpu.concatenate %260, %259 in 1 : vector<4x239xf32>, vector<4x17xf32> -> vector<4x256xf32>
    %262 = vector.broadcast %24 : vector<1x256xf32> to vector<4x256xf32>
    %263 = arith.mulf %261, %262 : vector<4x256xf32>
    %c8_140 = arith.constant 8 : index
    %c0_141 = arith.constant 0 : index
    %c0_142 = arith.constant 0 : index
    %264 = vector.load %arg1[%c8_140, %c0_141, %c0_142] : memref<9x32x4xf32, #tpu.memory_space<vmem>>, vector<1x32x4xf32>
    %265 = vector.shape_cast %264 : vector<1x32x4xf32> to vector<32x4xf32>
    %cst_143 = arith.constant dense<0.000000e+00> : vector<32x256xf32>
    %266 = tpu.matmul %265, %263, %cst_143 {dimension_numbers = #tpu.dot_dimension_numbers<[1], [0], [0], [1], [0, 0, 1, 1], [], []>} : vector<32x4xf32>, vector<4x256xf32>, vector<32x256xf32> -> vector<32x256xf32>
    %267 = arith.addf %258, %266 : vector<32x256xf32>
    %c0_144 = arith.constant 0 : index
    %c0_145 = arith.constant 0 : index
    %268 = vector.load %arg2[%c0_144, %c0_145] : memref<32x1xf32, #tpu.memory_space<vmem>>, vector<32x1xf32>
    %269 = vector.broadcast %268 : vector<32x1xf32> to vector<32x256xf32>
    %270 = arith.addf %267, %269 : vector<32x256xf32>
    %cst_146 = arith.constant 0.000000e+00 : f32
    %271 = vector.broadcast %cst_146 : f32 to vector<32x256xf32>
    %272 = arith.maximumf %270, %271 : vector<32x256xf32>
    %273 = arith.truncf %272 : vector<32x256xf32> to vector<32x256xbf16>
    %cst_147 = arith.constant 0.000000e+00 : f32
    %274 = vector.broadcast %cst_147 : f32 to vector<32x256xf32>
    %cst_148 = arith.constant 0.000000e+00 : bf16
    %275 = vector.broadcast %cst_148 : bf16 to vector<32x17xbf16>
    %276 = vector.extract_strided_slice %273 {offsets = [0, 0], sizes = [32, 239], strides = [1, 1]} : vector<32x256xbf16> to vector<32x239xbf16>
    %277 = tpu.concatenate %275, %276 in 1 : vector<32x17xbf16>, vector<32x239xbf16> -> vector<32x256xbf16>
    %278 = arith.truncf %20 : vector<1x256xf32> to vector<1x256xbf16>
    %279 = vector.broadcast %278 : vector<1x256xbf16> to vector<32x256xbf16>
    %280 = arith.mulf %277, %279 : vector<32x256xbf16>
    %c0_149 = arith.constant 0 : index
    %c0_150 = arith.constant 0 : index
    %c0_151 = arith.constant 0 : index
    %281 = vector.load %arg3[%c0_149, %c0_150, %c0_151] : memref<9x32x32xbf16, #tpu.memory_space<vmem>>, vector<1x32x32xbf16>
    %282 = vector.shape_cast %281 : vector<1x32x32xbf16> to vector<32x32xbf16>
    %cst_152 = arith.constant dense<0.000000e+00> : vector<32x256xf32>
    %283 = tpu.matmul %282, %280, %cst_152 {dimension_numbers = #tpu.dot_dimension_numbers<[1], [0], [0], [1], [0, 0, 1, 1], [], []>} : vector<32x32xbf16>, vector<32x256xbf16>, vector<32x256xf32> -> vector<32x256xf32>
    %284 = arith.addf %274, %283 : vector<32x256xf32>
    %cst_153 = arith.constant 0.000000e+00 : bf16
    %285 = vector.broadcast %cst_153 : bf16 to vector<32x16xbf16>
    %286 = vector.extract_strided_slice %273 {offsets = [0, 0], sizes = [32, 240], strides = [1, 1]} : vector<32x256xbf16> to vector<32x240xbf16>
    %287 = tpu.concatenate %285, %286 in 1 : vector<32x16xbf16>, vector<32x240xbf16> -> vector<32x256xbf16>
    %c1_154 = arith.constant 1 : index
    %c0_155 = arith.constant 0 : index
    %c0_156 = arith.constant 0 : index
    %288 = vector.load %arg3[%c1_154, %c0_155, %c0_156] : memref<9x32x32xbf16, #tpu.memory_space<vmem>>, vector<1x32x32xbf16>
    %289 = vector.shape_cast %288 : vector<1x32x32xbf16> to vector<32x32xbf16>
    %cst_157 = arith.constant dense<0.000000e+00> : vector<32x256xf32>
    %290 = tpu.matmul %289, %287, %cst_157 {dimension_numbers = #tpu.dot_dimension_numbers<[1], [0], [0], [1], [0, 0, 1, 1], [], []>} : vector<32x32xbf16>, vector<32x256xbf16>, vector<32x256xf32> -> vector<32x256xf32>
    %291 = arith.addf %284, %290 : vector<32x256xf32>
    %cst_158 = arith.constant 0.000000e+00 : bf16
    %292 = vector.broadcast %cst_158 : bf16 to vector<32x15xbf16>
    %293 = vector.extract_strided_slice %273 {offsets = [0, 0], sizes = [32, 241], strides = [1, 1]} : vector<32x256xbf16> to vector<32x241xbf16>
    %294 = tpu.concatenate %292, %293 in 1 : vector<32x15xbf16>, vector<32x241xbf16> -> vector<32x256xbf16>
    %295 = arith.truncf %24 : vector<1x256xf32> to vector<1x256xbf16>
    %296 = vector.broadcast %295 : vector<1x256xbf16> to vector<32x256xbf16>
    %297 = arith.mulf %294, %296 : vector<32x256xbf16>
    %c2_159 = arith.constant 2 : index
    %c0_160 = arith.constant 0 : index
    %c0_161 = arith.constant 0 : index
    %298 = vector.load %arg3[%c2_159, %c0_160, %c0_161] : memref<9x32x32xbf16, #tpu.memory_space<vmem>>, vector<1x32x32xbf16>
    %299 = vector.shape_cast %298 : vector<1x32x32xbf16> to vector<32x32xbf16>
    %cst_162 = arith.constant dense<0.000000e+00> : vector<32x256xf32>
    %300 = tpu.matmul %299, %297, %cst_162 {dimension_numbers = #tpu.dot_dimension_numbers<[1], [0], [0], [1], [0, 0, 1, 1], [], []>} : vector<32x32xbf16>, vector<32x256xbf16>, vector<32x256xf32> -> vector<32x256xf32>
    %301 = arith.addf %291, %300 : vector<32x256xf32>
    %cst_163 = arith.constant 0.000000e+00 : bf16
    %302 = vector.broadcast %cst_163 : bf16 to vector<32x1xbf16>
    %303 = vector.extract_strided_slice %273 {offsets = [0, 0], sizes = [32, 255], strides = [1, 1]} : vector<32x256xbf16> to vector<32x255xbf16>
    %304 = tpu.concatenate %302, %303 in 1 : vector<32x1xbf16>, vector<32x255xbf16> -> vector<32x256xbf16>
    %305 = arith.truncf %20 : vector<1x256xf32> to vector<1x256xbf16>
    %306 = vector.broadcast %305 : vector<1x256xbf16> to vector<32x256xbf16>
    %307 = arith.mulf %304, %306 : vector<32x256xbf16>
    %c3_164 = arith.constant 3 : index
    %c0_165 = arith.constant 0 : index
    %c0_166 = arith.constant 0 : index
    %308 = vector.load %arg3[%c3_164, %c0_165, %c0_166] : memref<9x32x32xbf16, #tpu.memory_space<vmem>>, vector<1x32x32xbf16>
    %309 = vector.shape_cast %308 : vector<1x32x32xbf16> to vector<32x32xbf16>
    %cst_167 = arith.constant dense<0.000000e+00> : vector<32x256xf32>
    %310 = tpu.matmul %309, %307, %cst_167 {dimension_numbers = #tpu.dot_dimension_numbers<[1], [0], [0], [1], [0, 0, 1, 1], [], []>} : vector<32x32xbf16>, vector<32x256xbf16>, vector<32x256xf32> -> vector<32x256xf32>
    %311 = arith.addf %301, %310 : vector<32x256xf32>
    %c4_168 = arith.constant 4 : index
    %c0_169 = arith.constant 0 : index
    %c0_170 = arith.constant 0 : index
    %312 = vector.load %arg3[%c4_168, %c0_169, %c0_170] : memref<9x32x32xbf16, #tpu.memory_space<vmem>>, vector<1x32x32xbf16>
    %313 = vector.shape_cast %312 : vector<1x32x32xbf16> to vector<32x32xbf16>
    %cst_171 = arith.constant dense<0.000000e+00> : vector<32x256xf32>
    %314 = tpu.matmul %313, %273, %cst_171 {dimension_numbers = #tpu.dot_dimension_numbers<[1], [0], [0], [1], [0, 0, 1, 1], [], []>} : vector<32x32xbf16>, vector<32x256xbf16>, vector<32x256xf32> -> vector<32x256xf32>
    %315 = arith.addf %311, %314 : vector<32x256xf32>
    %cst_172 = arith.constant 0.000000e+00 : bf16
    %316 = vector.broadcast %cst_172 : bf16 to vector<32x1xbf16>
    %317 = vector.extract_strided_slice %273 {offsets = [0, 1], sizes = [32, 255], strides = [1, 1]} : vector<32x256xbf16> to vector<32x255xbf16>
    %318 = tpu.concatenate %317, %316 in 1 : vector<32x255xbf16>, vector<32x1xbf16> -> vector<32x256xbf16>
    %319 = arith.truncf %24 : vector<1x256xf32> to vector<1x256xbf16>
    %320 = vector.broadcast %319 : vector<1x256xbf16> to vector<32x256xbf16>
    %321 = arith.mulf %318, %320 : vector<32x256xbf16>
    %c5_173 = arith.constant 5 : index
    %c0_174 = arith.constant 0 : index
    %c0_175 = arith.constant 0 : index
    %322 = vector.load %arg3[%c5_173, %c0_174, %c0_175] : memref<9x32x32xbf16, #tpu.memory_space<vmem>>, vector<1x32x32xbf16>
    %323 = vector.shape_cast %322 : vector<1x32x32xbf16> to vector<32x32xbf16>
    %cst_176 = arith.constant dense<0.000000e+00> : vector<32x256xf32>
    %324 = tpu.matmul %323, %321, %cst_176 {dimension_numbers = #tpu.dot_dimension_numbers<[1], [0], [0], [1], [0, 0, 1, 1], [], []>} : vector<32x32xbf16>, vector<32x256xbf16>, vector<32x256xf32> -> vector<32x256xf32>
    %325 = arith.addf %315, %324 : vector<32x256xf32>
    %cst_177 = arith.constant 0.000000e+00 : bf16
    %326 = vector.broadcast %cst_177 : bf16 to vector<32x15xbf16>
    %327 = vector.extract_strided_slice %273 {offsets = [0, 15], sizes = [32, 241], strides = [1, 1]} : vector<32x256xbf16> to vector<32x241xbf16>
    %328 = tpu.concatenate %327, %326 in 1 : vector<32x241xbf16>, vector<32x15xbf16> -> vector<32x256xbf16>
    %329 = arith.truncf %20 : vector<1x256xf32> to vector<1x256xbf16>
    %330 = vector.broadcast %329 : vector<1x256xbf16> to vector<32x256xbf16>
    %331 = arith.mulf %328, %330 : vector<32x256xbf16>
    %c6_178 = arith.constant 6 : index
    %c0_179 = arith.constant 0 : index
    %c0_180 = arith.constant 0 : index
    %332 = vector.load %arg3[%c6_178, %c0_179, %c0_180] : memref<9x32x32xbf16, #tpu.memory_space<vmem>>, vector<1x32x32xbf16>
    %333 = vector.shape_cast %332 : vector<1x32x32xbf16> to vector<32x32xbf16>
    %cst_181 = arith.constant dense<0.000000e+00> : vector<32x256xf32>
    %334 = tpu.matmul %333, %331, %cst_181 {dimension_numbers = #tpu.dot_dimension_numbers<[1], [0], [0], [1], [0, 0, 1, 1], [], []>} : vector<32x32xbf16>, vector<32x256xbf16>, vector<32x256xf32> -> vector<32x256xf32>
    %335 = arith.addf %325, %334 : vector<32x256xf32>
    %cst_182 = arith.constant 0.000000e+00 : bf16
    %336 = vector.broadcast %cst_182 : bf16 to vector<32x16xbf16>
    %337 = vector.extract_strided_slice %273 {offsets = [0, 16], sizes = [32, 240], strides = [1, 1]} : vector<32x256xbf16> to vector<32x240xbf16>
    %338 = tpu.concatenate %337, %336 in 1 : vector<32x240xbf16>, vector<32x16xbf16> -> vector<32x256xbf16>
    %c7_183 = arith.constant 7 : index
    %c0_184 = arith.constant 0 : index
    %c0_185 = arith.constant 0 : index
    %339 = vector.load %arg3[%c7_183, %c0_184, %c0_185] : memref<9x32x32xbf16, #tpu.memory_space<vmem>>, vector<1x32x32xbf16>
    %340 = vector.shape_cast %339 : vector<1x32x32xbf16> to vector<32x32xbf16>
    %cst_186 = arith.constant dense<0.000000e+00> : vector<32x256xf32>
    %341 = tpu.matmul %340, %338, %cst_186 {dimension_numbers = #tpu.dot_dimension_numbers<[1], [0], [0], [1], [0, 0, 1, 1], [], []>} : vector<32x32xbf16>, vector<32x256xbf16>, vector<32x256xf32> -> vector<32x256xf32>
    %342 = arith.addf %335, %341 : vector<32x256xf32>
    %cst_187 = arith.constant 0.000000e+00 : bf16
    %343 = vector.broadcast %cst_187 : bf16 to vector<32x17xbf16>
    %344 = vector.extract_strided_slice %273 {offsets = [0, 17], sizes = [32, 239], strides = [1, 1]} : vector<32x256xbf16> to vector<32x239xbf16>
    %345 = tpu.concatenate %344, %343 in 1 : vector<32x239xbf16>, vector<32x17xbf16> -> vector<32x256xbf16>
    %346 = arith.truncf %24 : vector<1x256xf32> to vector<1x256xbf16>
    %347 = vector.broadcast %346 : vector<1x256xbf16> to vector<32x256xbf16>
    %348 = arith.mulf %345, %347 : vector<32x256xbf16>
    %c8_188 = arith.constant 8 : index
    %c0_189 = arith.constant 0 : index
    %c0_190 = arith.constant 0 : index
    %349 = vector.load %arg3[%c8_188, %c0_189, %c0_190] : memref<9x32x32xbf16, #tpu.memory_space<vmem>>, vector<1x32x32xbf16>
    %350 = vector.shape_cast %349 : vector<1x32x32xbf16> to vector<32x32xbf16>
    %cst_191 = arith.constant dense<0.000000e+00> : vector<32x256xf32>
    %351 = tpu.matmul %350, %348, %cst_191 {dimension_numbers = #tpu.dot_dimension_numbers<[1], [0], [0], [1], [0, 0, 1, 1], [], []>} : vector<32x32xbf16>, vector<32x256xbf16>, vector<32x256xf32> -> vector<32x256xf32>
    %352 = arith.addf %342, %351 : vector<32x256xf32>
    %c0_192 = arith.constant 0 : index
    %c0_193 = arith.constant 0 : index
    %353 = vector.load %arg4[%c0_192, %c0_193] : memref<32x1xf32, #tpu.memory_space<vmem>>, vector<32x1xf32>
    %354 = vector.broadcast %353 : vector<32x1xf32> to vector<32x256xf32>
    %355 = arith.addf %352, %354 : vector<32x256xf32>
    %cst_194 = arith.constant 0.000000e+00 : f32
    %356 = vector.broadcast %cst_194 : f32 to vector<32x256xf32>
    %357 = arith.maximumf %355, %356 : vector<32x256xf32>
    %c1_195 = arith.constant 1 : index
    %c0_196 = arith.constant 0 : index
    %c0_197 = arith.constant 0 : index
    %358 = vector.load %arg5[%c1_195, %c0_196, %c0_197] : memref<2x32x256xf32, #tpu.memory_space<vmem>>, vector<1x32x256xf32>
    %359 = vector.shape_cast %358 : vector<1x32x256xf32> to vector<32x256xf32>
    %360 = vector.shape_cast %357 : vector<32x256xf32> to vector<1x32x256xf32>
    tpu.vector_store %arg5[%c1_195, %c0_196, %c0_197], %360 {strides = array<i32>} : memref<2x32x256xf32, #tpu.memory_space<vmem>>, vector<1x32x256xf32>,
    return
  }
}

</mosaic_0001>

<bundles_post_ra>
// kernel: twocon_forward.1
= control target key start
LH: loop header
LB: loop body
LE: loop exit
PB: predicated region body
PF: predicated region fallthrough
CT: control target
= control target key end

     0   :  { %v4955_v1 = vmov 0.0   ;;  %s4956_s20 = smov 16   ;;  %s4957_s21 = smov 17   ;;  %v21_v5 = vlaneseq  ;;  %vm67_vm1 = vcmask 138240   ;;  %vm82_vm3 = vcmask 130048   ;;  %s6140_s0 = inlined_call_operand.vmem [shape: f32[2,4,256], index: 0, kind: input, shape index: {}]   ;;  %s6141_s1 = inlined_call_operand.vmem [shape: f32[9,32,4], index: 1, kind: input, shape index: {}]   ;;  %s6142_s2 = inlined_call_operand.vmem [shape: f32[32,1], index: 2, kind: input, shape index: {}]   ;;  %s6143_s3 = inlined_call_operand.vmem [shape: bf16[9,32,32], index: 3, kind: input, shape index: {}]   ;;  %s6144_s4 = inlined_call_operand.vmem [shape: f32[32,1], index: 4, kind: input, shape index: {}]   ;;  %s6145_s5 = inlined_call_operand.vmem [shape: f32[2,32,256], index: 5, kind: output, shape index: {}]  }
   0x1   :  { %v4998_v0 = vld [vmem:[%s6140_s0] sm:$0xff]  ;;  %174 = vmatprep.mubr.f32.mxu0 %v4955_v1  ;;  %s4958_s22 = smov 15   ;;  %s4959_s23 = smov 1   ;;  %v5036_v3 = vld [vmem:[%s6140_s0 + $0x8] sm:$0xff]  ;;  %vm104_vm4 = vcmask 1043456   ;;  %vm91_vm6 = vcmask 31744   ;;  %vm5685_vm14 = vmneg %vm82_vm3 }
   0x2   :  { %78 = vrot.lane.b32.xlu0 %v4998_v0, %s4956_s20  ;;  %63 = vrot.lane.b32.xlu1 %v4998_v0, %s4957_s21  ;;  %v5007_v2 = vcombine.high %v4998_v0, %v4998_v0  ;;  %s4960_s24 = smov 127   ;;  %s4961_s25 = smov 113   ;;  %v5044_v4 = vcombine.high %v5036_v3, %v5036_v3  ;;  %v22_v6 = vand.u32 127, %v21_v5  ;;  %v5091_v20 = vld [vmem:[%s6141_s1 + $0x20] sm:$0xff]  ;;  %vm310_vm7 = vcmask 121856   ;;  %v5107_v26 = vld [vmem:[%s6141_s1 + $0x28] sm:$0xff] }
   0x3   :  { %s4962_s26 = smov 112   ;;  %s4963_s29 = smov 111   ;;  %v5119_v29 = vld [vmem:[%s6141_s1 + $0x30] sm:$0xff]  ;;  %vm441_vm9 = vcmask 7168   ;;  %v5127_v32 = vld [vmem:[%s6141_s1 + $0x38] sm:$0xff]  ;;  %v5140_v36 = vld [vmem:[%s6141_s1] sm:$0xff] }
   0x4   :  { %v23_v7 = vadd.s32 128, %v22_v6  ;;  %v28_v8 = vand.u32 15, %v22_v6  ;;  %v5150_v39 = vld [vmem:[%s6141_s1 + $0x8] sm:$0xff]  ;;  %v5160_v40 = vld [vmem:[%s6141_s1 + $0x10] sm:$0xff]  ;;  %v5168_v41 = vld [vmem:[%s6141_s1 + $0x18] sm:$0xff]  ;;  %vm690_vm10 = vcmask 1039360  }
   0x5   :  { %v5177_v43 = vld [vmem:[%s6141_s1 + $0x40] sm:$0xff]  ;;  %v5186_v45 = vld [vmem:[%s6141_s1 + $0x48] sm:$0xff]  ;;  %v5197_v46 = vld [vmem:[%s6141_s1 + $0x50] sm:$0xff]  ;;  %vm821_vm11 = vcmask 924672   ;;  %vm952_vm12 = vcmask 916480   ;;  %vm1079_vm13 = vcmask 908288  }
   0x6   :  { %80 = vrot.lane.b32.xlu0 %v5007_v2, %s4956_s20  ;;  %65 = vrot.lane.b32.xlu1 %v5007_v2, %s4957_s21  ;;  %v35_v9 = vand.u32 15, %v23_v7  ;;  %vm48_vm0 = vcmp.gt.s32.totalorder %v28_v8, 0  ;;  %vm54_vm8 = vcmp.lt.s32.totalorder %v28_v8, 15  ;;  %v5205_v48 = vld [vmem:[%s6141_s1 + $0x58] sm:$0xff]  ;;  %v5214_v50 = vld [vmem:[%s6141_s1 + $0x60] sm:$0xff]  ;;  %vm1318_vm15 = vcmask 261120  }
   0x7   :  { %v5079_v12 = vsel %vm48_vm0, 1.0, %v4955_v1  ;;  %v5130_v33 = vsel %vm54_vm8, 1.0, %v4955_v1  ;;  %v5223_v52 = vld [vmem:[%s6141_s1 + $0x68] sm:$0xff]  ;;  %v5234_v53 = vld [vmem:[%s6141_s1 + $0x70] sm:$0xff]  ;;  %v5242_v56 = vld [vmem:[%s6141_s1 + $0x78] sm:$0xff] }
   0x8   :  { %vm49_vm2 = vcmp.gt.s32.totalorder %v35_v9, 0  ;;  %vm55_vm5 = vcmp.lt.s32.totalorder %v35_v9, 15  ;;  %v5252_v59 = vld [vmem:[%s6141_s1 + $0x80] sm:$0xff]  ;;  %v5262_v62 = vld [vmem:[%s6141_s1 + $0x88] sm:$0xff]  ;;  %v5272_v63 = vld [vmem:[%s6141_s1 + $0x90] sm:$0xff] }
   0x9   :  { %v5083_v14 = vsel %vm49_vm2, 1.0, %v4955_v1  ;;  %v5098_v23 = vsel %vm55_vm5, 1.0, %v4955_v1  ;;  %v5289_v7 = vld [vmem:[%s6141_s1 + $0xa0] sm:$0xff] }
   0xa   :  { %308 = vrot.lane.b32.xlu1 %v5007_v2, %s4958_s22  ;;  %306 = vrot.lane.b32.xlu0 %v4998_v0, %s4958_s22 }
   0xe   :  { %439 = vrot.lane.b32.xlu1 %v5007_v2, %s4959_s23  ;;  %437 = vrot.lane.b32.xlu0 %v4998_v0, %s4959_s23 }
  0x12   :  { %688 = vrot.lane.b32.xlu0 %v5007_v2, %s4960_s24  ;;  %686 = vrot.lane.b32.xlu1 %v4998_v0, %s4960_s24 }
  0x16   :  { %819 = vrot.lane.b32.xlu0 %v5007_v2, %s4961_s25  ;;  %817 = vrot.lane.b32.xlu1 %v4998_v0, %s4961_s25 }
  0x1a   :  { %950 = vrot.lane.b32.xlu0 %v5007_v2, %s4962_s26  ;;  %948 = vrot.lane.b32.xlu1 %v4998_v0, %s4962_s26 }
  0x1e   :  { %1077 = vrot.lane.b32.xlu0 %v5007_v2, %s4963_s29  ;;  %1075 = vrot.lane.b32.xlu1 %v4998_v0, %s4963_s29 }
  0x22   :  { %2225 = vrot.lane.b32.xlu1 %v5044_v4, %s4956_s20  ;;  %2223 = vrot.lane.b32.xlu0 %v5036_v3, %s4956_s20 }
  0x26   :  { %2211 = vrot.lane.b32.xlu1 %v5044_v4, %s4957_s21  ;;  %2209 = vrot.lane.b32.xlu0 %v5036_v3, %s4957_s21 }
  0x2a   :  { %2449 = vrot.lane.b32.xlu1 %v5044_v4, %s4958_s22  ;;  %2447 = vrot.lane.b32.xlu0 %v5036_v3, %s4958_s22 }
  0x2e   :  { %2578 = vrot.lane.b32.xlu1 %v5044_v4, %s4959_s23  ;;  %2576 = vrot.lane.b32.xlu0 %v5036_v3, %s4959_s23 }
  0x32   :  { %2824 = vrot.lane.b32.xlu0 %v5044_v4, %s4960_s24  ;;  %2822 = vrot.lane.b32.xlu1 %v5036_v3, %s4960_s24 }
  0x36   :  { %2953 = vrot.lane.b32.xlu0 %v5044_v4, %s4961_s25  ;;  %2951 = vrot.lane.b32.xlu1 %v5036_v3, %s4961_s25 }
  0x3a   :  { %3082 = vrot.lane.b32.xlu0 %v5044_v4, %s4962_s26  ;;  %3080 = vrot.lane.b32.xlu1 %v5036_v3, %s4962_s26 }
  0x3e   :  { %3207 = vrot.lane.b32.xlu0 %v5044_v4, %s4963_s29  ;;  %3205 = vrot.lane.b32.xlu1 %v5036_v3, %s4963_s29 }
  0x74   :  { %v79_v10 = vpop.permute.xlu0 %78  ;;  %v64_v11 = vpop.permute.xlu1 %63 }
  0x75   :  { %v71_v13 = vsel %vm67_vm1, 0.0, %v64_v11  ;;  %v85_v22 = vsel %vm82_vm3, 0.0, %v79_v10 }
  0x76   :  { %v72_v17 = vmul.f32 %v5079_v12, %v71_v13  ;;  %v5307_v13 = vld [vmem:[%s6142_s2] sm:$0xff] }
  0x78   :  { %v81_v15 = vpop.permute.xlu0 %80  ;;  %v66_v16 = vpop.permute.xlu1 %65 }
  0x79   :  { %v83_v18 = vsel %vm82_vm3, %v79_v10, %v81_v15  ;;  %v68_v19 = vsel %vm67_vm1, %v64_v11, %v66_v16  ;;  %v5299_v10 = vld [vmem:[%s6141_s1 + $0xa8] sm:$0xff]  ;;  %v4964_v11 = vmov 0   ;;  %v5318_v15 = vld [vmem:[%s6141_s1 + $0xb0] sm:$0xff] }
  0x7a   :  { %4324 = vmatprep.subr.msk.mxu0 %vm104_vm4, %v83_v18  ;;  %v73_v21 = vmul.f32 %v5083_v14, %v68_v19  ;;  %4915 = vset.pattern.permute.xlu0 %v4964_v11  ;;  %v5323_v16 = vld [vmem:[%s6142_s2 + $0x8] sm:$0xff]  ;;  %v5332_v18 = vld [vmem:[%s6141_s1 + $0xb8] sm:$0xff]  ;;  %v5337_v19 = vld [vmem:[%s6142_s2 + $0x10] sm:$0xff] }
  0x7b   :  { %4325 = vmatpush1.msk.msra.mxu0 %vm104_vm4, %v85_v22  ;;  %1212 = vperm.xlu0 %4915, %v5307_v13  }
  0x7c   :  { %4326 = vmatmul.mubr.msk.f32.vlgmr.msra.gmra.mrb[0].mxu0 %vm91_vm6, %v5091_v20  ;;  %4330 = vmatprep.subr.msk.mxu0 %vm104_vm4, %v73_v21  ;;  %v309_v24 = vpop.permute.xlu1 %308  ;;  %v307_v25 = vpop.permute.xlu0 %306 }
  0x7d   :  { %180 = vmatprep.mubr.f32.mxu0 %v4955_v1  ;;  %4331 = vmatpush1.msk.msra.mxu0 %vm104_vm4, %v72_v17  ;;  %v311_v27 = vsel %vm310_vm7, %v307_v25, %v309_v24  ;;  %v314_v34 = vsel %vm310_vm7, 0.0, %v307_v25  ;;  %v5346_v24 = vld [vmem:[%s6142_s2 + $0x18] sm:$0xff]  ;;  %v5352_v25 = vld [vmem:[%s6141_s1 + $0xc0] sm:$0xff] }
  0x7e   :  { %v316_v28 = vmul.f32 %v5098_v23, %v311_v27  ;;  %v315_v37 = vmul.f32 %v5130_v33, %v314_v34  ;;  %4916 = vset.pattern.permute.xlu1 %v4964_v11  ;;  %1357 = vmatprep.mubr.bf16.mxu1 %v4964_v11 }
  0x7f   :  { %1217 = vperm.xlu1 %4916, %v5323_v16   ;;  %1227 = vperm.xlu0 %4915, %v5346_v24  }
  0x80   :  { %4327 = vmatmul.mubr.msk.f32.gmra.mrb[2].mxu0 %vm91_vm6, %v5107_v26  ;;  %4340 = vmatprep.subr.msk.mxu0 %vm104_vm4, %v316_v28  ;;  %v440_v30 = vpop.permute.xlu1 %439  ;;  %v438_v31 = vpop.permute.xlu0 %437 }
  0x81   :  { %186 = vmatprep.mubr.f32.mxu0 %v4955_v1  ;;  %v442_v35 = vsel %vm441_vm9, %v438_v31, %v440_v30  ;;  %v445_v42 = vsel %vm441_vm9, 0.0, %v438_v31  ;;  %v5363_v30 = vld [vmem:[%s6141_s1 + $0xc8] sm:$0xff]  ;;  %v5373_v31 = vld [vmem:[%s6141_s1 + $0xd0] sm:$0xff] }
  0x82   :  { %v447_v38 = vmul.f32 %v5083_v14, %v442_v35  ;;  %v446_v44 = vmul.f32 %v5079_v12, %v445_v42  ;;  %v5381_v35 = vld [vmem:[%s6141_s1 + $0xd8] sm:$0xff] }
  0x83   :  { %1222 = vperm.xlu1 %4916, %v5337_v19  }
  0x84   :  { %4328 = vmatmul.mubr.msk.f32.gmra.mrb[4].mxu0 %vm91_vm6, %v5119_v29  ;;  %v689_v47 = vpop.permute.xlu0 %688  ;;  %v687_v54 = vpop.permute.xlu1 %686 }
  0x85   :  { %192 = vmatprep.mubr.f32.mxu0 %v4955_v1  ;;  %v694_v49 = vsel %vm690_vm10, %v689_v47, 0.0  ;;  %v691_v57 = vsel %vm690_vm10, %v687_v54, %v689_v47  ;;  %v5410_v54 = vld [vmem:[%s6141_s1 + $0xf0] sm:$0xff] }
  0x86   :  { %v696_v51 = vmul.f32 %v5098_v23, %v694_v49  ;;  %v695_v60 = vmul.f32 %v5130_v33, %v691_v57 }
  0x88   :  { %4329 = vmatmul.mubr.msk.f32.gmra.mrb[6].mxu0 %vm91_vm6, %v5127_v32  ;;  %v820_v55 = vpop.permute.xlu0 %819 }
  0x89   :  { %281 = vmatprep.mubr.f32.mxu0 %v4955_v1  ;;  %v825_v58 = vsel %vm821_vm11, %v820_v55, 0.0 }
  0x8a   :  { %v827_v61 = vmul.f32 %v5083_v14, %v825_v58  ;;  %v5418_v58 = vld [vmem:[%s6141_s1 + $0xf8] sm:$0xff] }
  0x8c   :  { %4332 = vmatmul.mubr.msk.f32.vlgmr.msra.gmra.mrb[0].mxu0 %vm91_vm6, %v5140_v36  ;;  %v951_v6 = vpop.permute.xlu0 %950 }
  0x8d   :  { %287 = vmatprep.mubr.f32.mxu0 %v4955_v1  ;;  %4341 = vmatpush1.msk.msra.mxu0 %vm104_vm4, %v315_v37  ;;  %v955_v9 = vsel %vm952_vm12, %v951_v6, 0.0 }
  0x8e   :  { %4350 = vmatprep.subr.msk.mxu0 %vm104_vm4, %v447_v38 }
  0x90   :  { %4333 = vmatmul.mubr.msk.f32.gmra.mrb[2].mxu0 %vm91_vm6, %v5150_v39  ;;  %v1078_v17 = vpop.permute.xlu0 %1077 }
  0x91   :  { %293 = vmatprep.mubr.f32.mxu0 %v4955_v1  ;;  %v1083_v22 = vsel %vm1079_vm13, %v1078_v17, 0.0 }
  0x92   :  { %v1085_v28 = vmul.f32 %v5098_v23, %v1083_v22 }
  0x94   :  { %4334 = vmatmul.mubr.msk.f32.gmra.mrb[4].mxu0 %vm91_vm6, %v5160_v40  ;;  %v2224_v42 = vpop.permute.xlu0 %2223 }
  0x95   :  { %299 = vmatprep.mubr.f32.mxu0 %v4955_v1 }
  0x98   :  { %4335 = vmatmul.mubr.msk.f32.gmra.mrb[6].mxu0 %vm91_vm6, %v5168_v41  ;;  %v2210_v57 = vpop.permute.xlu0 %2209 }
  0x99   :  { %404 = vmatprep.mubr.f32.mxu0 %v4955_v1  ;;  %v2216_v22 = vsel %vm67_vm1, 0.0, %v2210_v57 }
  0x9c   :  { %4342 = vmatmul.mubr.msk.f32.vlgmr.msra.gmra.mrb[0].mxu0 %vm91_vm6, %v5177_v43 }
  0x9d   :  { %410 = vmatprep.mubr.f32.mxu0 %v4955_v1  ;;  %4351 = vmatpush1.msk.msra.mxu0 %vm104_vm4, %v446_v44  ;;  %v5390_v44 = vld [vmem:[%s6141_s1 + $0xe0] sm:$0xff] }
  0x9e   :  { %4360 = vmatprep.subr.msk.mxu0 %vm104_vm4, %v5007_v2  ;;  %v5280_v2 = vld [vmem:[%s6141_s1 + $0x98] sm:$0xff] }
  0xa0   :  { %4343 = vmatmul.mubr.msk.f32.gmra.mrb[2].mxu0 %vm91_vm6, %v5186_v45 }
  0xa1   :  { %416 = vmatprep.mubr.f32.mxu0 %v4955_v1 }
  0xa4   :  { %4344 = vmatmul.mubr.msk.f32.gmra.mrb[4].mxu0 %vm91_vm6, %v5197_v46 }
  0xa5   :  { %422 = vmatprep.mubr.f32.mxu0 %v4955_v1 }
  0xa8   :  { %4345 = vmatmul.mubr.msk.f32.gmra.mrb[6].mxu0 %vm91_vm6, %v5205_v48 }
  0xa9   :  { %535 = vmatprep.mubr.f32.mxu0 %v4955_v1 }
  0xac   :  { %4352 = vmatmul.mubr.msk.f32.vlgmr.msra.gmra.mrb[0].mxu0 %vm91_vm6, %v5214_v50 }
  0xad   :  { %541 = vmatprep.mubr.f32.mxu0 %v4955_v1  ;;  %4361 = vmatpush1.msk.msra.mxu0 %vm104_vm4, %v4998_v0  ;;  %v818_v0 = vpop.permute.xlu1 %817 }
  0xae   :  { %4370 = vmatprep.subr.msk.mxu0 %vm104_vm4, %v696_v51  ;;  %v822_v5 = vsel %vm821_vm11, %v818_v0, %v820_v55  ;;  %v5400_v51 = vld [vmem:[%s6141_s1 + $0xe8] sm:$0xff]  ;;  %v2229_v0 = vsel %vm82_vm3, 0.0, %v2224_v42 }
  0xaf   :  { %v826_v8 = vmul.f32 %v5079_v12, %v822_v5 }
  0xb0   :  { %4353 = vmatmul.mubr.msk.f32.gmra.mrb[2].mxu0 %vm91_vm6, %v5223_v52 }
  0xb1   :  { %547 = vmatprep.mubr.f32.mxu0 %v4955_v1  ;;  %v949_v21 = vpop.permute.xlu1 %948 }
  0xb2   :  { %v953_v27 = vsel %vm952_vm12, %v949_v21, %v951_v6  ;;  %v5437_v6 = vld [vmem:[%s6141_s1 + $0x108] sm:$0xff]  ;;  %v5455_v21 = vld [vmem:[%s6141_s1 + $0x118] sm:$0xff] }
  0xb4   :  { %4354 = vmatmul.mubr.msk.f32.gmra.mrb[4].mxu0 %vm91_vm6, %v5234_v53 }
  0xb5   :  { %553 = vmatprep.mubr.f32.mxu0 %v4955_v1  ;;  %v1076_v34 = vpop.permute.xlu1 %1075 }
  0xb6   :  { %v1080_v37 = vsel %vm1079_vm13, %v1076_v34, %v1078_v17  ;;  %v2448_v17 = vpop.permute.xlu0 %2447 }
  0xb7   :  { %v1084_v47 = vmul.f32 %v5130_v33, %v1080_v37 }
  0xb8   :  { %4355 = vmatmul.mubr.msk.f32.gmra.mrb[6].mxu0 %vm91_vm6, %v5242_v56 }
  0xb9   :  { %653 = vmatprep.mubr.f32.mxu0 %v4955_v1  ;;  %v2226_v38 = vpop.permute.xlu1 %2225 }
  0xba   :  { %v2227_v49 = vsel %vm82_vm3, %v2224_v42, %v2226_v38  ;;  %v2577_v38 = vpop.permute.xlu0 %2576 }
  0xbc   :  { %4362 = vmatmul.mubr.msk.f32.vlgmr.msra.gmra.mrb[0].mxu0 %vm91_vm6, %v5252_v59 }
  0xbd   :  { %659 = vmatprep.mubr.f32.mxu0 %v4955_v1  ;;  %4371 = vmatpush1.msk.msra.mxu0 %vm104_vm4, %v695_v60  ;;  %v2212_v55 = vpop.permute.xlu1 %2211 }
  0xbe   :  { %4380 = vmatprep.subr.msk.mxu0 %vm104_vm4, %v827_v61  ;;  %v2213_v60 = vsel %vm67_vm1, %v2210_v57, %v2212_v55  ;;  %v5427_v61 = vld [vmem:[%s6141_s1 + $0x100] sm:$0xff] }
  0xbf   :  { %v2218_v5 = vmul.f32 %v5083_v14, %v2213_v60 }
  0xc0   :  { %4363 = vmatmul.mubr.msk.f32.gmra.mrb[2].mxu0 %vm91_vm6, %v5262_v62 }
  0xc1   :  { %665 = vmatprep.mubr.f32.mxu0 %v4955_v1 }
  0xc4   :  { %4364 = vmatmul.mubr.msk.f32.gmra.mrb[4].mxu0 %vm91_vm6, %v5272_v63 }
  0xc5   :  { %671 = vmatprep.mubr.f32.mxu0 %v4955_v1 }
  0xc8   :  { %4365 = vmatmul.mubr.msk.f32.gmra.mrb[6].mxu0 %vm91_vm6, %v5280_v2 }
  0xc9   :  { %784 = vmatprep.mubr.f32.mxu0 %v4955_v1 }
  0xcc   :  { %4372 = vmatmul.mubr.msk.f32.vlgmr.msra.gmra.mrb[0].mxu0 %vm91_vm6, %v5289_v7 }
  0xcd   :  { %790 = vmatprep.mubr.f32.mxu0 %v4955_v1  ;;  %4381 = vmatpush1.msk.msra.mxu0 %vm104_vm4, %v826_v8  ;;  %v5447_v8 = vld [vmem:[%s6141_s1 + $0x110] sm:$0xff] }
  0xce   :  { %4390 = vmatprep.subr.msk.mxu0 %vm104_vm4, %v955_v9  ;;  %v2450_v9 = vpop.permute.xlu1 %2449 }
  0xd0   :  { %4373 = vmatmul.mubr.msk.f32.gmra.mrb[2].mxu0 %vm91_vm6, %v5299_v10 }
  0xd1   :  { %796 = vmatprep.mubr.f32.mxu0 %v4955_v1 }
  0xd2   :  { %v2579_v37 = vpop.permute.xlu1 %2578 }
  0xd3   :  { %v2580_v42 = vsel %vm441_vm9, %v2577_v38, %v2579_v37 }
  0xd4   :  { %4374 = vmatmul.mubr.msk.f32.gmra.mrb[4].mxu0 %vm91_vm6, %v5318_v15 }
  0xd5   :  { %802 = vmatprep.mubr.f32.mxu0 %v4955_v1 }
  0xd8   :  { %4375 = vmatmul.mubr.msk.f32.gmra.mrb[6].mxu0 %vm91_vm6, %v5332_v18 }
  0xd9   :  { %915 = vmatprep.mubr.f32.mxu0 %v4955_v1 }
  0xdc   :  { %4382 = vmatmul.mubr.msk.f32.vlgmr.msra.gmra.mrb[0].mxu0 %vm91_vm6, %v5352_v25 }
  0xdd   :  { %921 = vmatprep.mubr.f32.mxu0 %v4955_v1  ;;  %4391 = vmatpush1.msk.msra.mxu0 %vm104_vm4, %v953_v27  ;;  %v2451_v27 = vsel %vm310_vm7, %v2448_v17, %v2450_v9 }
  0xde   :  { %4400 = vmatprep.subr.msk.mxu0 %vm104_vm4, %v1085_v28  ;;  %v2217_v28 = vmul.f32 %v5079_v12, %v2216_v22  ;;  %v2456_v34 = vmul.f32 %v5098_v23, %v2451_v27 }
  0xe0   :  { %4383 = vmatmul.mubr.msk.f32.gmra.mrb[2].mxu0 %vm91_vm6, %v5363_v30 }
  0xe1   :  { %927 = vmatprep.mubr.f32.mxu0 %v4955_v1 }
  0xe4   :  { %4384 = vmatmul.mubr.msk.f32.gmra.mrb[4].mxu0 %vm91_vm6, %v5373_v31 }
  0xe5   :  { %933 = vmatprep.mubr.f32.mxu0 %v4955_v1 }
  0xe8   :  { %4385 = vmatmul.mubr.msk.f32.gmra.mrb[6].mxu0 %vm91_vm6, %v5381_v35 }
  0xe9   :  { %1042 = vmatprep.mubr.f32.mxu0 %v4955_v1 }
  0xec   :  { %4392 = vmatmul.mubr.msk.f32.vlgmr.msra.gmra.mrb[0].mxu0 %vm91_vm6, %v5390_v44 }
  0xed   :  { %1048 = vmatprep.mubr.f32.mxu0 %v4955_v1  ;;  %4401 = vmatpush1.msk.msra.mxu0 %vm104_vm4, %v1084_v47  ;;  %v2585_v47 = vmul.f32 %v5083_v14, %v2580_v42 }
  0xee   :  { %4485 = vmatprep.subr.msk.mxu0 %vm104_vm4, %v2227_v49 }
  0xf0   :  { %4393 = vmatmul.mubr.msk.f32.gmra.mrb[2].mxu0 %vm91_vm6, %v5400_v51 }
  0xf1   :  { %1054 = vmatprep.mubr.f32.mxu0 %v4955_v1 }
  0xf4   :  { %4394 = vmatmul.mubr.msk.f32.gmra.mrb[4].mxu0 %vm91_vm6, %v5410_v54 }
  0xf5   :  { %1060 = vmatprep.mubr.f32.mxu0 %v4955_v1 }
  0xf8   :  { %4395 = vmatmul.mubr.msk.f32.gmra.mrb[6].mxu0 %vm91_vm6, %v5418_v58 }
  0xf9   :  { %1173 = vmatprep.mubr.f32.mxu0 %v4955_v1 }
  0xfc   :  { %4402 = vmatmul.mubr.msk.f32.vlgmr.msra.gmra.mrb[0].mxu0 %vm91_vm6, %v5427_v61 }
  0xfd   :  { %1179 = vmatprep.mubr.f32.mxu0 %v4955_v1  ;;  %4486 = vmatpush1.msk.msra.mxu0 %vm104_vm4, %v2229_v0 }
  0xfe   :  { %4491 = vmatprep.subr.msk.mxu0 %vm104_vm4, %v2218_v5 }
 0x100   :  { %4403 = vmatmul.mubr.msk.f32.gmra.mrb[2].mxu0 %vm91_vm6, %v5437_v6 }
 0x101   :  { %1185 = vmatprep.mubr.f32.mxu0 %v4955_v1 }
 0x104   :  { %4404 = vmatmul.mubr.msk.f32.gmra.mrb[4].mxu0 %vm91_vm6, %v5447_v8 }
 0x105   :  { %1191 = vmatprep.mubr.f32.mxu0 %v4955_v1 }
 0x108   :  { %4405 = vmatmul.mubr.msk.f32.gmra.mrb[6].mxu0 %vm91_vm6, %v5455_v21 }
 0x109   :  { %2315 = vmatprep.mubr.f32.mxu0 %v4955_v1 }
 0x10c   :  { %4487 = vmatmul.mubr.msk.f32.vlgmr.msra.gmra.mrb[8].mxu0 %vm91_vm6, %v5091_v20  ;;  %v2454_v20 = vsel %vm310_vm7, 0.0, %v2448_v17 }
 0x10d   :  { %2321 = vmatprep.mubr.f32.mxu0 %v4955_v1  ;;  %4492 = vmatpush1.msk.msra.mxu0 %vm104_vm4, %v2217_v28 }
 0x10e   :  { %4501 = vmatprep.subr.msk.mxu0 %vm104_vm4, %v2456_v34 }
 0x110   :  { %4488 = vmatmul.mubr.msk.f32.gmra.mrb[10].mxu0 %vm91_vm6, %v5107_v26  ;;  %v2455_v26 = vmul.f32 %v5130_v33, %v2454_v20 }
 0x111   :  { %2327 = vmatprep.mubr.f32.mxu0 %v4955_v1 }
 0x114   :  { %4489 = vmatmul.mubr.msk.f32.gmra.mrb[12].mxu0 %vm91_vm6, %v5119_v29  ;;  %v2583_v29 = vsel %vm441_vm9, 0.0, %v2577_v38 }
 0x115   :  { %2333 = vmatprep.mubr.f32.mxu0 %v4955_v1 }
 0x118   :  { %4490 = vmatmul.mubr.msk.f32.gmra.mrb[14].mxu0 %vm91_vm6, %v5127_v32  ;;  %v2584_v32 = vmul.f32 %v5079_v12, %v2583_v29 }
 0x119   :  { %2422 = vmatprep.mubr.f32.mxu0 %v4955_v1 }
 0x11c   :  { %4493 = vmatmul.mubr.msk.f32.vlgmr.msra.gmra.mrb[8].mxu0 %vm91_vm6, %v5140_v36  ;;  %v2825_v36 = vpop.permute.xlu0 %2824 }
 0x11d   :  { %2428 = vmatprep.mubr.f32.mxu0 %v4955_v1  ;;  %4502 = vmatpush1.msk.msra.mxu0 %vm104_vm4, %v2455_v26 }
 0x11e   :  { %4511 = vmatprep.subr.msk.mxu0 %vm104_vm4, %v2585_v47 }
 0x120   :  { %4494 = vmatmul.mubr.msk.f32.gmra.mrb[10].mxu0 %vm91_vm6, %v5150_v39  ;;  %v2829_v39 = vsel %vm690_vm10, %v2825_v36, 0.0 }
 0x121   :  { %2434 = vmatprep.mubr.f32.mxu0 %v4955_v1 }
 0x124   :  { %4495 = vmatmul.mubr.msk.f32.gmra.mrb[12].mxu0 %vm91_vm6, %v5160_v40  ;;  %v2823_v40 = vpop.permute.xlu1 %2822 }
 0x125   :  { %2440 = vmatprep.mubr.f32.mxu0 %v4955_v1 }
 0x128   :  { %4496 = vmatmul.mubr.msk.f32.gmra.mrb[14].mxu0 %vm91_vm6, %v5168_v41  ;;  %v2954_v41 = vpop.permute.xlu0 %2953 }
 0x129   :  { %2543 = vmatprep.mubr.f32.mxu0 %v4955_v1 }
 0x12c   :  { %4503 = vmatmul.mubr.msk.f32.vlgmr.msra.gmra.mrb[8].mxu0 %vm91_vm6, %v5177_v43  ;;  %v2826_v43 = vsel %vm690_vm10, %v2823_v40, %v2825_v36  ;;  %v4919_v40 = vld [vmem:[%s6143_s3 + $0x10] sm:$0xff]  }
 0x12d   :  { %2549 = vmatprep.mubr.f32.mxu0 %v4955_v1  ;;  %4512 = vmatpush1.msk.msra.mxu0 %vm104_vm4, %v2584_v32 }
 0x12e   :  { %4521 = vmatprep.subr.msk.mxu0 %vm104_vm4, %v5044_v4  ;;  %v2831_v4 = vmul.f32 %v5098_v23, %v2829_v39 }
 0x130   :  { %4504 = vmatmul.mubr.msk.f32.gmra.mrb[10].mxu0 %vm91_vm6, %v5186_v45  ;;  %v2958_v45 = vsel %vm821_vm11, %v2954_v41, 0.0 }
 0x131   :  { %2555 = vmatprep.mubr.f32.mxu0 %v4955_v1 }
 0x134   :  { %4505 = vmatmul.mubr.msk.f32.gmra.mrb[12].mxu0 %vm91_vm6, %v5197_v46  ;;  %v2960_v46 = vmul.f32 %v5083_v14, %v2958_v45 }
 0x135   :  { %2561 = vmatprep.mubr.f32.mxu0 %v4955_v1 }
 0x138   :  { %4506 = vmatmul.mubr.msk.f32.gmra.mrb[14].mxu0 %vm91_vm6, %v5205_v48  ;;  %v2952_v48 = vpop.permute.xlu1 %2951 }
 0x139   :  { %2672 = vmatprep.mubr.f32.mxu0 %v4955_v1 }
 0x13c   :  { %4513 = vmatmul.mubr.msk.f32.vlgmr.msra.gmra.mrb[8].mxu0 %vm91_vm6, %v5214_v50  ;;  %v2955_v50 = vsel %vm821_vm11, %v2952_v48, %v2954_v41  ;;  %v5702_v41 = vpack.c.bf16 %v5079_v12, %v5079_v12 }
 0x13d   :  { %2678 = vmatprep.mubr.f32.mxu0 %v4955_v1  ;;  %4522 = vmatpush1.msk.msra.mxu0 %vm104_vm4, %v5036_v3  ;;  %v2830_v3 = vmul.f32 %v5130_v33, %v2826_v43 }
 0x13e   :  { %4531 = vmatprep.subr.msk.mxu0 %vm104_vm4, %v2831_v4  ;;  %v5695_v4 = vpack.c.bf16 %v5083_v14, %v5083_v14 }
 0x140   :  { %4514 = vmatmul.mubr.msk.f32.gmra.mrb[10].mxu0 %vm91_vm6, %v5223_v52  ;;  %v3083_v52 = vpop.permute.xlu0 %3082 }
 0x141   :  { %2684 = vmatprep.mubr.f32.mxu0 %v4955_v1 }
 0x144   :  { %4515 = vmatmul.mubr.msk.f32.gmra.mrb[12].mxu0 %vm91_vm6, %v5234_v53  ;;  %v2959_v53 = vmul.f32 %v5079_v12, %v2955_v50 }
 0x145   :  { %2690 = vmatprep.mubr.f32.mxu0 %v4955_v1 }
 0x148   :  { %4516 = vmatmul.mubr.msk.f32.gmra.mrb[14].mxu0 %vm91_vm6, %v5242_v56  ;;  %v3086_v56 = vsel %vm952_vm12, %v3083_v52, 0.0 }
 0x149   :  { %2789 = vmatprep.mubr.f32.mxu0 %v4955_v1 }
 0x14c   :  { %4523 = vmatmul.mubr.msk.f32.vlgmr.msra.gmra.mrb[8].mxu0 %vm91_vm6, %v5252_v59  ;;  %v3208_v59 = vpop.permute.xlu0 %3207 }
 0x14d   :  { %2795 = vmatprep.mubr.f32.mxu0 %v4955_v1  ;;  %4532 = vmatpush1.msk.msra.mxu0 %vm104_vm4, %v2830_v3 }
 0x14e   :  { %4541 = vmatprep.subr.msk.mxu0 %vm104_vm4, %v2960_v46 }
 0x150   :  { %4524 = vmatmul.mubr.msk.f32.gmra.mrb[10].mxu0 %vm91_vm6, %v5262_v62  ;;  %v3081_v62 = vpop.permute.xlu1 %3080 }
 0x151   :  { %2801 = vmatprep.mubr.f32.mxu0 %v4955_v1 }
 0x154   :  { %4525 = vmatmul.mubr.msk.f32.gmra.mrb[12].mxu0 %vm91_vm6, %v5272_v63  ;;  %v3212_v63 = vsel %vm1079_vm13, %v3208_v59, 0.0 }
 0x155   :  { %2807 = vmatprep.mubr.f32.mxu0 %v4955_v1 }
 0x158   :  { %4526 = vmatmul.mubr.msk.f32.gmra.mrb[14].mxu0 %vm91_vm6, %v5280_v2  ;;  %v3084_v2 = vsel %vm952_vm12, %v3081_v62, %v3083_v52 }
 0x159   :  { %2918 = vmatprep.mubr.f32.mxu0 %v4955_v1 }
 0x15c   :  { %4533 = vmatmul.mubr.msk.f32.vlgmr.msra.gmra.mrb[8].mxu0 %vm91_vm6, %v5289_v7  ;;  %v3214_v7 = vmul.f32 %v5098_v23, %v3212_v63  ;;  %v4920_v63 = vld [vmem:[%s6143_s3 + $0x18] sm:$0xff]  }
 0x15d   :  { %2924 = vmatprep.mubr.f32.mxu0 %v4955_v1  ;;  %4542 = vmatpush1.msk.msra.mxu0 %vm104_vm4, %v2959_v53 }
 0x15e   :  { %4551 = vmatprep.subr.msk.mxu0 %vm104_vm4, %v3086_v56  ;;  %v5716_v56 = vpack.c.bf16 %v5098_v23, %v5098_v23 }
 0x160   :  { %4534 = vmatmul.mubr.msk.f32.gmra.mrb[10].mxu0 %vm91_vm6, %v5299_v10  ;;  %v3206_v10 = vpop.permute.xlu1 %3205 }
 0x161   :  { %2930 = vmatprep.mubr.f32.mxu0 %v4955_v1 }
 0x164   :  { %4535 = vmatmul.mubr.msk.f32.gmra.mrb[12].mxu0 %vm91_vm6, %v5318_v15  ;;  %v3209_v15 = vsel %vm1079_vm13, %v3206_v10, %v3208_v59 }
 0x165   :  { %2936 = vmatprep.mubr.f32.mxu0 %v4955_v1 }
 0x168   :  { %4536 = vmatmul.mubr.msk.f32.gmra.mrb[14].mxu0 %vm91_vm6, %v5332_v18  ;;  %v3213_v18 = vmul.f32 %v5130_v33, %v3209_v15 }
 0x169   :  { %3047 = vmatprep.mubr.f32.mxu0 %v4955_v1 }
 0x16c   :  { %4543 = vmatmul.mubr.msk.f32.vlgmr.msra.gmra.mrb[8].mxu0 %vm91_vm6, %v5352_v25 }
 0x16d   :  { %3053 = vmatprep.mubr.f32.mxu0 %v4955_v1  ;;  %4552 = vmatpush1.msk.msra.mxu0 %vm104_vm4, %v3084_v2 }
 0x16e   :  { %4561 = vmatprep.subr.msk.mxu0 %vm104_vm4, %v3214_v7 }
 0x170   :  { %4544 = vmatmul.mubr.msk.f32.gmra.mrb[10].mxu0 %vm91_vm6, %v5363_v30  ;;  %v1213_v30 = vpop.permute.xlu0 %1212 }
 0x171   :  { %3059 = vmatprep.mubr.f32.mxu0 %v4955_v1 }
 0x174   :  { %4545 = vmatmul.mubr.msk.f32.gmra.mrb[12].mxu0 %vm91_vm6, %v5373_v31  ;;  %v1228_v22 = vpop.permute.xlu0 %1227 }
 0x175   :  { %3065 = vmatprep.mubr.f32.mxu0 %v4955_v1 }
 0x178   :  { %4546 = vmatmul.mubr.msk.f32.gmra.mrb[14].mxu0 %vm91_vm6, %v5381_v35  ;;  %v1218_v35 = vpop.permute.xlu1 %1217 }
 0x179   :  { %3172 = vmatprep.mubr.f32.mxu0 %v4955_v1 }
 0x17c   :  { %4553 = vmatmul.mubr.msk.f32.vlgmr.msra.gmra.mrb[8].mxu0 %vm91_vm6, %v5390_v44  ;;  %v1223_v5 = vpop.permute.xlu1 %1222 }
 0x17d   :  { %3178 = vmatprep.mubr.f32.mxu0 %v4955_v1  ;;  %4562 = vmatpush1.msk.msra.mxu0 %vm104_vm4, %v3213_v18 }
 0x180   :  { %4554 = vmatmul.mubr.msk.f32.gmra.mrb[10].mxu0 %vm91_vm6, %v5400_v51 }
 0x181   :  { %3184 = vmatprep.mubr.f32.mxu0 %v4955_v1 }
 0x184   :  { %4555 = vmatmul.mubr.msk.f32.gmra.mrb[12].mxu0 %vm91_vm6, %v5410_v54 }
 0x185   :  { %3190 = vmatprep.mubr.f32.mxu0 %v4955_v1 }
 0x188   :  { %4556 = vmatmul.mubr.msk.f32.gmra.mrb[14].mxu0 %vm91_vm6, %v5418_v58 }
 0x189   :  { %3301 = vmatprep.mubr.f32.mxu0 %v4955_v1 }
 0x18c   :  { %4563 = vmatmul.mubr.msk.f32.vlgmr.msra.gmra.mrb[8].mxu0 %vm91_vm6, %v5427_v61 }
 0x18d   :  { %3307 = vmatprep.mubr.f32.mxu0 %v4955_v1 }
 0x190   :  { %4564 = vmatmul.mubr.msk.f32.gmra.mrb[10].mxu0 %vm91_vm6, %v5437_v6 }
 0x191   :  { %3313 = vmatprep.mubr.f32.mxu0 %v4955_v1 }
 0x194   :  { %4565 = vmatmul.mubr.msk.f32.gmra.mrb[12].mxu0 %vm91_vm6, %v5447_v8 }
 0x195   :  { %3319 = vmatprep.mubr.f32.mxu0 %v4955_v1 }
 0x198   :  { %4566 = vmatmul.mubr.msk.f32.gmra.mrb[14].mxu0 %vm91_vm6, %v5455_v21 }
 0x1cf   :  { %v1175_v25 = vpop.f32.mrb[0].mxu0 }
 0x1d0   :  { %v1177_v31 = vpop.f32.mrb[1].mxu0  ;;  %v1230_v44 = vadd.f32 %v1213_v30, %v1175_v25 }
 0x1d1   :  { %v1231_v49 = vadd.f32 %v1213_v30, %v1177_v31 }
 0x1d2   :  { %v1238_v58 = vmax.f32 %v1230_v44, 0.0  ;;  %v5729_v44 = vpack.c.bf16 %v5130_v33, %v5130_v33 }
 0x1d3   :  { %v1181_v51 = vpop.f32.mrb[2].mxu0  ;;  %v1239_v61 = vmax.f32 %v1231_v49, 0.0 }
 0x1d4   :  { %v1232_v54 = vadd.f32 %v1218_v35, %v1181_v51  ;;  %v1183_v55 = vpop.f32.mrb[3].mxu0 }
 0x1d5   :  { %v1233_v57 = vadd.f32 %v1218_v35, %v1183_v55 }
 0x1d6   :  { %v1240_v60 = vmax.f32 %v1232_v54, 0.0  ;;  %v4921_v54 = vld [vmem:[%s6143_s3] sm:$0xff]  }
 0x1d7   :  { %v1241_v0 = vmax.f32 %v1233_v57, 0.0  ;;  %v1187_v6 = vpop.f32.mrb[4].mxu0 }
 0x1d8   :  { %v5608_v1 = vpack.c.bf16 %v1240_v60, %v1238_v58  ;;  %v1189_v8 = vpop.f32.mrb[5].mxu0  ;;  %v1234_v17 = vadd.f32 %v1223_v5, %v1187_v6 }
 0x1d9   :  { %v5610_v9 = vpack.c.bf16 %v1241_v0, %v1239_v61  ;;  %v1235_v21 = vadd.f32 %v1223_v5, %v1189_v8 }
 0x1da   :  { %1284 = vrot.lane.b32.xlu1 %v5608_v1, %s4956_s20  ;;  %v1242_v38 = vmax.f32 %v1234_v17, 0.0 }
 0x1db   :  { %v1193_v27 = vpop.f32.mrb[6].mxu0  ;;  %1286 = vrot.lane.b32.xlu0 %v5610_v9, %s4956_s20  ;;  %v1243_v42 = vmax.f32 %v1235_v21, 0.0 }
 0x1dc   :  { %v1236_v28 = vadd.f32 %v1228_v22, %v1193_v27  ;;  %v1195_v34 = vpop.f32.mrb[7].mxu0 }
 0x1dd   :  { %v1237_v37 = vadd.f32 %v1228_v22, %v1195_v34  ;;  %v4922_v22 = vld [vmem:[%s6143_s3 + $0x8] sm:$0xff]  }
 0x1de   :  { %v1244_v20 = vmax.f32 %v1236_v28, 0.0 }
 0x1df   :  { %v1245_v26 = vmax.f32 %v1237_v37, 0.0  ;;  %v4923_v37 = vld [vmem:[%s6143_s3 + $0x20] sm:$0xff]  }
 0x1e0   :  { %v5616_v47 = vpack.c.bf16 %v1244_v20, %v1242_v38 }
 0x1e1   :  { %v5618_v29 = vpack.c.bf16 %v1245_v26, %v1243_v42 }
 0x1e2   :  { %1288 = vrot.lane.b32.xlu1 %v5616_v47, %s4956_s20 }
 0x1e3   :  { %1290 = vrot.lane.b32.xlu0 %v5618_v29, %s4956_s20 }
 0x1e6   :  { %1254 = vrot.lane.b32.xlu1 %v5608_v1, %s4957_s21 }
 0x1e7   :  { %1256 = vrot.lane.b32.xlu0 %v5610_v9, %s4957_s21 }
 0x1ea   :  { %1258 = vrot.lane.b32.xlu1 %v5616_v47, %s4957_s21 }
 0x1eb   :  { %1260 = vrot.lane.b32.xlu0 %v5618_v29, %s4957_s21 }
 0x1ee   :  { %1447 = vrot.lane.b32.xlu1 %v5608_v1, %s4958_s22 }
 0x1ef   :  { %1449 = vrot.lane.b32.xlu0 %v5610_v9, %s4958_s22 }
 0x1f2   :  { %1451 = vrot.lane.b32.xlu1 %v5616_v47, %s4958_s22 }
 0x1f3   :  { %1453 = vrot.lane.b32.xlu0 %v5618_v29, %s4958_s22 }
 0x1f6   :  { %1554 = vrot.lane.b32.xlu1 %v5608_v1, %s4959_s23 }
 0x1f7   :  { %1556 = vrot.lane.b32.xlu0 %v5610_v9, %s4959_s23 }
 0x1fa   :  { %1558 = vrot.lane.b32.xlu1 %v5616_v47, %s4959_s23 }
 0x1fb   :  { %1560 = vrot.lane.b32.xlu0 %v5618_v29, %s4959_s23 }
 0x1fe   :  { %3340 = vperm.xlu1 %4916, %v5307_v13  }
 0x1ff   :  { %3345 = vperm.xlu0 %4915, %v5323_v16  }
 0x202   :  { %3350 = vperm.xlu1 %4916, %v5337_v19  }
 0x203   :  { %3355 = vperm.xlu0 %4915, %v5346_v24  }
 0x206   :  { %1743 = vrot.lane.b32.xlu1 %v5610_v9, %s4960_s24 }
 0x207   :  { %1741 = vrot.lane.b32.xlu0 %v5608_v1, %s4960_s24 }
 0x20a   :  { %1747 = vrot.lane.b32.xlu1 %v5618_v29, %s4960_s24 }
 0x20b   :  { %1745 = vrot.lane.b32.xlu0 %v5616_v47, %s4960_s24 }
 0x20e   :  { %1848 = vrot.lane.b32.xlu1 %v5610_v9, %s4961_s25 }
 0x20f   :  { %1846 = vrot.lane.b32.xlu0 %v5608_v1, %s4961_s25 }
 0x212   :  { %1852 = vrot.lane.b32.xlu1 %v5618_v29, %s4961_s25 }
 0x213   :  { %1850 = vrot.lane.b32.xlu0 %v5616_v47, %s4961_s25 }
 0x216   :  { %1951 = vrot.lane.b32.xlu1 %v5608_v1, %s4962_s26 }
 0x217   :  { %1953 = vrot.lane.b32.xlu0 %v5610_v9, %s4962_s26 }
 0x21a   :  { %1955 = vrot.lane.b32.xlu1 %v5616_v47, %s4962_s26 }
 0x21b   :  { %1957 = vrot.lane.b32.xlu0 %v5618_v29, %s4962_s26 }
 0x21e   :  { %2054 = vrot.lane.b32.xlu1 %v5610_v9, %s4963_s29 }
 0x21f   :  { %2052 = vrot.lane.b32.xlu0 %v5608_v1, %s4963_s29 }
 0x222   :  { %2058 = vrot.lane.b32.xlu1 %v5618_v29, %s4963_s29 }
 0x223   :  { %2056 = vrot.lane.b32.xlu0 %v5616_v47, %s4963_s29 }
 0x24c   :  { %v1285_v13 = vpop.permute.xlu1 %1284 }
 0x24d   :  { %v1287_v16 = vpop.permute.xlu0 %1286 }
 0x24e   :  { %v1293_v24 = vsel %vm82_vm3, %v1285_v13, %v1287_v16 }
 0x24f   :  { %1325 = vmatprep.subr.bf16.mxu1 %v1293_v24 }
 0x250   :  { %4413 = vmatpush1.bf16.msk.msra.mxu1 %vm5685_vm14, %v1285_v13 }
 0x254   :  { %v1289_v32 = vpop.permute.xlu1 %1288 }
 0x255   :  { %v1291_v36 = vpop.permute.xlu0 %1290 }
 0x256   :  { %v1294_v39 = vsel %vm82_vm3, %v1289_v32, %v1291_v36 }
 0x257   :  { %1327 = vmatprep.subr.bf16.mxu1 %v1294_v39 }
 0x258   :  { %v1255_v43 = vpop.permute.xlu1 %1254  ;;  %4415 = vmatpush1.bf16.msk.msra.mxu1 %vm5685_vm14, %v1289_v32 }
 0x259   :  { %v1269_v45 = vsel %vm67_vm1, 0, %v1255_v43  ;;  %v1257_v3 = vpop.permute.xlu0 %1256 }
 0x25a   :  { %v1263_v14 = vsel %vm67_vm1, %v1255_v43, %v1257_v3  ;;  %v1276_v48 = vmul.bf16 %v5702_v41, %v1269_v45  ;;  %v4924_v43 = vld [vmem:[%s6143_s3 + $0x28] sm:$0xff]  }
 0x25b   :  { %v1277_v46 = vmul.bf16 %v5695_v4, %v1263_v14  ;;  %4416 = vmatmul.mubr.msk.bf16.vlgmr.msra.gmra.mrb[0].mxu1 %vm1318_vm15, %v4919_v40 }
 0x25c   :  { %v1259_v50 = vpop.permute.xlu1 %1258  ;;  %1367 = vmatprep.mubr.bf16.mxu1 %v4964_v11 }
 0x25d   :  { %v1272_v12 = vsel %vm67_vm1, 0, %v1259_v50  ;;  %1394 = vmatprep.subr.bf16.mxu1 %v1277_v46  ;;  %v1261_v52 = vpop.permute.xlu0 %1260 }
 0x25e   :  { %v1264_v53 = vsel %vm67_vm1, %v1259_v50, %v1261_v52  ;;  %1395 = vmatpush1.bf16.msra.mxu1 %v1276_v48  ;;  %v1278_v2 = vmul.bf16 %v5702_v41, %v1272_v12 }
 0x25f   :  { %v1279_v59 = vmul.bf16 %v5695_v4, %v1264_v53  ;;  %v3303_v62 = vpop.f32.mrb[8].mxu0 }
 0x260   :  { %v3305_v7 = vpop.f32.mrb[9].mxu0  ;;  %v1448_v10 = vpop.permute.xlu1 %1447 }
 0x261   :  { %1396 = vmatprep.subr.bf16.mxu1 %v1279_v59  ;;  %v1450_v15 = vpop.permute.xlu0 %1449  ;;  %v1461_v49 = vsel %vm310_vm7, 0, %v1448_v10 }
 0x262   :  { %v1456_v18 = vsel %vm310_vm7, %v1448_v10, %v1450_v15  ;;  %1397 = vmatpush1.bf16.msra.mxu1 %v1278_v2  ;;  %v1468_v61 = vmul.bf16 %v5729_v44, %v1461_v49  ;;  %v4927_v49 = vld [vmem:[%s6143_s3 + $0x40] sm:$0xff]  }
 0x263   :  { %v1469_v25 = vmul.bf16 %v5716_v56, %v1456_v18  ;;  %4417 = vmatmul.mubr.msk.bf16.gmra.mrb[4].mxu1 %vm1318_vm15, %v4920_v63  ;;  %v3309_v23 = vpop.f32.mrb[10].mxu0 }
 0x264   :  { %v3311_v30 = vpop.f32.mrb[11].mxu0  ;;  %v1452_v31 = vpop.permute.xlu1 %1451  ;;  %1426 = vmatprep.mubr.bf16.mxu1 %v4964_v11 }
 0x265   :  { %1493 = vmatprep.subr.bf16.mxu1 %v1469_v25  ;;  %v1454_v35 = vpop.permute.xlu0 %1453  ;;  %v1464_v0 = vsel %vm310_vm7, 0, %v1452_v31  ;;  %v4925_v25 = vld [vmem:[%s6143_s3 + $0x30] sm:$0xff]  }
 0x266   :  { %v1457_v55 = vsel %vm310_vm7, %v1452_v31, %v1454_v35  ;;  %v1470_v17 = vmul.bf16 %v5729_v44, %v1464_v0  ;;  %v4926_v35 = vld [vmem:[%s6143_s3 + $0x38] sm:$0xff]  }
 0x267   :  { %v3315_v51 = vpop.f32.mrb[12].mxu0  ;;  %v1471_v5 = vmul.bf16 %v5716_v56, %v1457_v55 }
 0x268   :  { %v3317_v57 = vpop.f32.mrb[13].mxu0  ;;  %v1555_v58 = vpop.permute.xlu1 %1554 }
 0x269   :  { %v1557_v60 = vpop.permute.xlu0 %1556  ;;  %v1568_v34 = vsel %vm441_vm9, 0, %v1555_v58 }
 0x26a   :  { %v1563_v6 = vsel %vm441_vm9, %v1555_v58, %v1557_v60  ;;  %v1573_v20 = vmul.bf16 %v1568_v34, %v5702_v41 }
 0x26b   :  { %4420 = vmatmul.mubr.msk.bf16.vlgmr.msra.gmra.mrb[0].mxu1 %vm1318_vm15, %v4921_v54  ;;  %v3321_v33 = vpop.f32.mrb[14].mxu0  ;;  %v1574_v21 = vmul.bf16 %v1563_v6, %v5695_v4 }
 0x26c   :  { %1494 = vmatpush1.bf16.msra.mxu1 %v1468_v61  ;;  %v3323_v8 = vpop.f32.mrb[15].mxu0  ;;  %1436 = vmatprep.mubr.bf16.mxu1 %v4964_v11  ;;  %v1559_v27 = vpop.permute.xlu1 %1558 }
 0x26d   :  { %1495 = vmatprep.subr.bf16.mxu1 %v1471_v5  ;;  %v1561_v28 = vpop.permute.xlu0 %1560  ;;  %v1571_v42 = vsel %vm441_vm9, 0, %v1559_v27 }
 0x26e   :  { %v1564_v38 = vsel %vm441_vm9, %v1559_v27, %v1561_v28  ;;  %v1575_v16 = vmul.bf16 %v1571_v42, %v5702_v41  ;;  %v4930_v42 = vld [vmem:[%s6143_s3 + $0x58] sm:$0xff]  }
 0x26f   :  { %v1576_v26 = vmul.bf16 %v1564_v38, %v5695_v4 }
 0x270   :  { %1496 = vmatpush1.bf16.msra.mxu1 %v1470_v17 }
 0x271   :  { %1598 = vmatprep.subr.bf16.mxu1 %v1574_v21  ;;  %v4929_v21 = vld [vmem:[%s6143_s3 + $0x50] sm:$0xff]  }
 0x273   :  { %4421 = vmatmul.mubr.msk.bf16.gmra.mrb[4].mxu1 %vm1318_vm15, %v4922_v22 }
 0x274   :  { %1525 = vmatprep.mubr.bf16.mxu1 %v4964_v11 }
 0x27b   :  { %4428 = vmatmul.mubr.msk.bf16.vlgmr.msra.gmra.mrb[0].mxu1 %vm1318_vm15, %v4923_v37 }
 0x27c   :  { %1599 = vmatpush1.bf16.msra.mxu1 %v1573_v20  ;;  %1535 = vmatprep.mubr.bf16.mxu1 %v4964_v11 }
 0x27d   :  { %1600 = vmatprep.subr.bf16.mxu1 %v1576_v26  ;;  %v3341_v13 = vpop.permute.xlu1 %3340 }
 0x27e   :  { %v3358_v24 = vadd.f32 %v3341_v13, %v3303_v62  ;;  %v3359_v32 = vadd.f32 %v3341_v13, %v3305_v7  ;;  %v3346_v36 = vpop.permute.xlu0 %3345 }
 0x27f   :  { %v3360_v39 = vadd.f32 %v3346_v36, %v3309_v23  ;;  %v3361_v40 = vadd.f32 %v3346_v36, %v3311_v30 }
 0x280   :  { %v3366_v45 = vmax.f32 %v3358_v24, 0.0  ;;  %v3367_v3 = vmax.f32 %v3359_v32, 0.0  ;;  %1601 = vmatpush1.bf16.msra.mxu1 %v1575_v16  ;;  %v4931_v16 = vld [vmem:[%s6143_s3 + $0x60] sm:$0xff]  }
 0x281   :  { %v3368_v14 = vmax.f32 %v3360_v39, 0.0  ;;  %v3369_v46 = vmax.f32 %v3361_v40, 0.0  ;;  %1680 = vmatprep.subr.bf16.mxu1 %v5610_v9  ;;  %v3351_v48 = vpop.permute.xlu1 %3350 }
 0x282   :  { %v3362_v50 = vadd.f32 %v3351_v48, %v3315_v51  ;;  %v3363_v12 = vadd.f32 %v3351_v48, %v3317_v57  ;;  %v3356_v52 = vpop.permute.xlu0 %3355 }
 0x283   :  { %v5764_v53 = vpack.c.bf16 %v3368_v14, %v3366_v45  ;;  %v5766_v59 = vpack.c.bf16 %v3369_v46, %v3367_v3  ;;  %v3364_v62 = vadd.f32 %v3356_v52, %v3321_v33  ;;  %v3365_v63 = vadd.f32 %v3356_v52, %v3323_v8  ;;  %4429 = vmatmul.mubr.msk.bf16.gmra.mrb[4].mxu1 %vm1318_vm15, %v4924_v43  ;;  %v4928_v33 = vld [vmem:[%s6143_s3 + $0x48] sm:$0xff]   ;;  %v2157_v46 = vld [vmem:[%s6144_s4] sm:$0xff]  ;;  %v2159_v52 = vld [vmem:[%s6144_s4 + $0x10] sm:$0xff] }
 0x284   :  { %v3370_v2 = vmax.f32 %v3362_v50, 0.0  ;;  %v3371_v7 = vmax.f32 %v3363_v12, 0.0  ;;  %1630 = vmatprep.mubr.bf16.mxu1 %v4964_v11  ;;  %v4932_v45 = vld [vmem:[%s6143_s3 + $0x68] sm:$0xff]   ;;  %v2160_v50 = vld [vmem:[%s6144_s4 + $0x18] sm:$0xff] }
 0x285   :  { %v3372_v10 = vmax.f32 %v3364_v62, 0.0  ;;  %v3373_v15 = vmax.f32 %v3365_v63, 0.0  ;;  %3410 = vrot.lane.b32.xlu0 %v5766_v59, %s4956_s20  ;;  %3408 = vrot.lane.b32.xlu1 %v5764_v53, %s4956_s20  ;;  %v1744_v23 = vpop.permute.xlu1 %1743  ;;  %v2158_v14 = vld [vmem:[%s6144_s4 + $0x8] sm:$0xff]  ;;  %v4933_v62 = vld [vmem:[%s6143_s3 + $0x70] sm:$0xff]  }
 0x286   :  { %v1755_v30 = vsel %vm690_vm10, %v1744_v23, 0 }
 0x287   :  { %v5774_v9 = vpack.c.bf16 %v3372_v10, %v3370_v2  ;;  %v5776_v18 = vpack.c.bf16 %v3373_v15, %v3371_v7  ;;  %v1761_v31 = vmul.bf16 %v1755_v30, %v5716_v56  ;;  %v4935_v30 = vld [vmem:[%s6143_s3 + $0x80] sm:$0xff]  }
 0x289   :  { %3414 = vrot.lane.b32.xlu0 %v5776_v18, %s4956_s20  ;;  %3412 = vrot.lane.b32.xlu1 %v5774_v9, %s4956_s20 }
 0x28b   :  { %4436 = vmatmul.mubr.msk.bf16.vlgmr.msra.gmra.mrb[0].mxu1 %vm1318_vm15, %v4925_v25 }
 0x28c   :  { %1681 = vmatpush1.bf16.msra.mxu1 %v5608_v1  ;;  %1640 = vmatprep.mubr.bf16.mxu1 %v4964_v11  ;;  %v1742_v1 = vpop.permute.xlu0 %1741 }
 0x28d   :  { %1682 = vmatprep.subr.bf16.mxu1 %v5618_v29  ;;  %3384 = vrot.lane.b32.xlu0 %v5766_v59, %s4957_s21  ;;  %v1748_v29 = vpop.permute.xlu1 %1747 }
 0x28e   :  { %3382 = vrot.lane.b32.xlu1 %v5764_v53, %s4957_s21  ;;  %v1758_v51 = vsel %vm690_vm10, %v1748_v29, 0 }
 0x28f   :  { %v1763_v58 = vmul.bf16 %v1758_v51, %v5716_v56 }
 0x290   :  { %1683 = vmatpush1.bf16.msra.mxu1 %v5616_v47  ;;  %v1750_v47 = vsel %vm690_vm10, %v1742_v1, %v1744_v23  ;;  %v1746_v54 = vpop.permute.xlu0 %1745  ;;  %v4934_v23 = vld [vmem:[%s6143_s3 + $0x78] sm:$0xff]  }
 0x291   :  { %1785 = vmatprep.subr.bf16.mxu1 %v1761_v31  ;;  %3388 = vrot.lane.b32.xlu0 %v5776_v18, %s4957_s21  ;;  %v1849_v55 = vpop.permute.xlu1 %1848  ;;  %v1760_v57 = vmul.bf16 %v1750_v47, %v5729_v44  ;;  %v1751_v60 = vsel %vm690_vm10, %v1746_v54, %v1748_v29  ;;  %v4936_v31 = vld [vmem:[%s6143_s3 + $0x88] sm:$0xff]   ;;  %v4937_v54 = vld [vmem:[%s6143_s3 + $0x10] sm:$0xff]  }
 0x292   :  { %3386 = vrot.lane.b32.xlu1 %v5774_v9, %s4957_s21  ;;  %v1860_v61 = vsel %vm821_vm11, %v1849_v55, 0  ;;  %v1762_v0 = vmul.bf16 %v1751_v60, %v5729_v44 }
 0x293   :  { %4437 = vmatmul.mubr.msk.bf16.gmra.mrb[4].mxu1 %vm1318_vm15, %v4926_v35  ;;  %v1866_v5 = vmul.bf16 %v1860_v61, %v5695_v4 }
 0x294   :  { %1712 = vmatprep.mubr.bf16.mxu1 %v4964_v11  ;;  %v1847_v6 = vpop.permute.xlu0 %1846 }
 0x295   :  { %3570 = vrot.lane.b32.xlu0 %v5766_v59, %s4958_s22  ;;  %v1853_v8 = vpop.permute.xlu1 %1852  ;;  %v1855_v17 = vsel %vm821_vm11, %v1847_v6, %v1849_v55 }
 0x296   :  { %3568 = vrot.lane.b32.xlu1 %v5764_v53, %s4958_s22  ;;  %v1863_v22 = vsel %vm821_vm11, %v1853_v8, 0  ;;  %v1865_v28 = vmul.bf16 %v1855_v17, %v5702_v41 }
 0x297   :  { %v1868_v34 = vmul.bf16 %v1863_v22, %v5695_v4 }
 0x298   :  { %v1851_v27 = vpop.permute.xlu0 %1850 }
 0x299   :  { %3574 = vrot.lane.b32.xlu0 %v5776_v18, %s4958_s22  ;;  %v1856_v37 = vsel %vm821_vm11, %v1851_v27, %v1853_v8  ;;  %v1952_v38 = vpop.permute.xlu1 %1951 }
 0x29a   :  { %3572 = vrot.lane.b32.xlu1 %v5774_v9, %s4958_s22  ;;  %v1867_v20 = vmul.bf16 %v1856_v37, %v5702_v41 }
 0x29b   :  { %4444 = vmatmul.mubr.msk.bf16.vlgmr.msra.gmra.mrb[0].mxu1 %vm1318_vm15, %v4927_v49 }
 0x29c   :  { %1786 = vmatpush1.bf16.msra.mxu1 %v1760_v57  ;;  %1722 = vmatprep.mubr.bf16.mxu1 %v4964_v11  ;;  %v1954_v26 = vpop.permute.xlu0 %1953 }
 0x29d   :  { %1787 = vmatprep.subr.bf16.mxu1 %v1763_v58  ;;  %3673 = vrot.lane.b32.xlu0 %v5766_v59, %s4959_s23  ;;  %v1956_v13 = vpop.permute.xlu1 %1955  ;;  %v1960_v32 = vsel %vm952_vm12, %v1952_v38, %v1954_v26 }
 0x29e   :  { %3671 = vrot.lane.b32.xlu1 %v5764_v53, %s4959_s23 }
 0x2a0   :  { %1788 = vmatpush1.bf16.msra.mxu1 %v1762_v0  ;;  %v1958_v36 = vpop.permute.xlu0 %1957 }
 0x2a1   :  { %1890 = vmatprep.subr.bf16.mxu1 %v1866_v5  ;;  %3677 = vrot.lane.b32.xlu0 %v5776_v18, %s4959_s23  ;;  %v2055_v24 = vpop.permute.xlu1 %2054  ;;  %v1961_v40 = vsel %vm952_vm12, %v1956_v13, %v1958_v36 }
 0x2a2   :  { %3675 = vrot.lane.b32.xlu1 %v5774_v9, %s4959_s23  ;;  %v2066_v39 = vsel %vm1079_vm13, %v2055_v24, 0 }
 0x2a3   :  { %4445 = vmatmul.mubr.msk.bf16.gmra.mrb[4].mxu1 %vm1318_vm15, %v4928_v33  ;;  %v2072_v43 = vmul.bf16 %v2066_v39, %v5716_v56 }
 0x2a4   :  { %1817 = vmatprep.mubr.bf16.mxu1 %v4964_v11  ;;  %v2053_v3 = vpop.permute.xlu0 %2052 }
 0x2a5   :  { %3855 = vrot.lane.b32.xlu0 %v5764_v53, %s4960_s24  ;;  %v2059_v48 = vpop.permute.xlu1 %2058  ;;  %v2061_v12 = vsel %vm1079_vm13, %v2053_v3, %v2055_v24 }
 0x2a6   :  { %3857 = vrot.lane.b32.xlu1 %v5766_v59, %s4960_s24  ;;  %v2069_v63 = vsel %vm1079_vm13, %v2059_v48, 0  ;;  %v2071_v7 = vmul.bf16 %v2061_v12, %v5729_v44 }
 0x2a7   :  { %v2074_v10 = vmul.bf16 %v2069_v63, %v5716_v56 }
 0x2a8   :  { %v2057_v2 = vpop.permute.xlu0 %2056 }
 0x2a9   :  { %3859 = vrot.lane.b32.xlu0 %v5774_v9, %s4960_s24  ;;  %v2062_v15 = vsel %vm1079_vm13, %v2057_v2, %v2059_v48  ;;  %v4941_v48 = vld [vmem:[%s6143_s3 + $0x20] sm:$0xff]   ;;  %v4942_v2 = vld [vmem:[%s6143_s3 + $0x28] sm:$0xff]  }
 0x2aa   :  { %3861 = vrot.lane.b32.xlu1 %v5776_v18, %s4960_s24  ;;  %v2073_v25 = vmul.bf16 %v2062_v15, %v5729_v44 }
 0x2ab   :  { %4452 = vmatmul.mubr.msk.bf16.vlgmr.msra.gmra.mrb[0].mxu1 %vm1318_vm15, %v4929_v21  ;;  %v4938_v21 = vld [vmem:[%s6143_s3 + $0x18] sm:$0xff]  }
 0x2ac   :  { %1891 = vmatpush1.bf16.msra.mxu1 %v1865_v28  ;;  %1827 = vmatprep.mubr.bf16.mxu1 %v4964_v11 }
 0x2ad   :  { %1892 = vmatprep.subr.bf16.mxu1 %v1868_v34  ;;  %3958 = vrot.lane.b32.xlu0 %v5764_v53, %s4961_s25 }
 0x2ae   :  { %3960 = vrot.lane.b32.xlu1 %v5766_v59, %s4961_s25 }
 0x2b0   :  { %1893 = vmatpush1.bf16.msra.mxu1 %v1867_v20 }
 0x2b1   :  { %4468 = vmatprep.subr.msk.bf16.mxu1 %vm952_vm12, %v1954_v26  ;;  %3962 = vrot.lane.b32.xlu0 %v5774_v9, %s4961_s25 }
 0x2b2   :  { %3964 = vrot.lane.b32.xlu1 %v5776_v18, %s4961_s25 }
 0x2b3   :  { %4453 = vmatmul.mubr.msk.bf16.gmra.mrb[4].mxu1 %vm1318_vm15, %v4930_v42  ;;  %v4939_v42 = vld [vmem:[%s6143_s3] sm:$0xff]  }
 0x2b4   :  { %1922 = vmatprep.mubr.bf16.mxu1 %v4964_v11 }
 0x2b5   :  { %4063 = vrot.lane.b32.xlu0 %v5766_v59, %s4962_s26 }
 0x2b6   :  { %4061 = vrot.lane.b32.xlu1 %v5764_v53, %s4962_s26 }
 0x2b9   :  { %4067 = vrot.lane.b32.xlu0 %v5776_v18, %s4962_s26 }
 0x2ba   :  { %4065 = vrot.lane.b32.xlu1 %v5774_v9, %s4962_s26 }
 0x2bb   :  { %4460 = vmatmul.mubr.msk.bf16.vlgmr.msra.gmra.mrb[0].mxu1 %vm1318_vm15, %v4931_v16 }
 0x2bc   :  { %1992 = vmatpush1.bf16.msra.mxu1 %v1960_v32  ;;  %1932 = vmatprep.mubr.bf16.mxu1 %v4964_v11 }
 0x2bd   :  { %4469 = vmatprep.subr.msk.bf16.mxu1 %vm952_vm12, %v1958_v36  ;;  %4160 = vrot.lane.b32.xlu0 %v5764_v53, %s4963_s29 }
 0x2be   :  { %4162 = vrot.lane.b32.xlu1 %v5766_v59, %s4963_s29 }
 0x2c0   :  { %1994 = vmatpush1.bf16.msra.mxu1 %v1961_v40 }
 0x2c1   :  { %2096 = vmatprep.subr.bf16.mxu1 %v2072_v43  ;;  %4164 = vrot.lane.b32.xlu0 %v5774_v9, %s4963_s29 }
 0x2c2   :  { %4166 = vrot.lane.b32.xlu1 %v5776_v18, %s4963_s29 }
 0x2c3   :  { %4461 = vmatmul.mubr.msk.bf16.gmra.mrb[4].mxu1 %vm1318_vm15, %v4932_v45  ;;  %v4940_v45 = vld [vmem:[%s6143_s3 + $0x8] sm:$0xff]  }
 0x2c4   :  { %2023 = vmatprep.mubr.bf16.mxu1 %v4964_v11 }
 0x2c5   :  { %2168 = vperm.xlu0 %4915, %v2158_v14  }
 0x2c6   :  { %2163 = vperm.xlu1 %4916, %v2157_v46  }
 0x2c9   :  { %2178 = vperm.xlu0 %4915, %v2160_v50  }
 0x2ca   :  { %2173 = vperm.xlu1 %4916, %v2159_v52  }
 0x2cb   :  { %4470 = vmatmul.mubr.msk.bf16.vlgmr.msra.gmra.mrb[0].mxu1 %vm1318_vm15, %v4933_v62 }
 0x2cc   :  { %2097 = vmatpush1.bf16.msra.mxu1 %v2071_v7  ;;  %2033 = vmatprep.mubr.bf16.mxu1 %v4964_v11  ;;  %v4943_v7 = vld [vmem:[%s6143_s3 + $0x30] sm:$0xff]  }
 0x2cd   :  { %2098 = vmatprep.subr.bf16.mxu1 %v2074_v10  ;;  %4274 = vperm.xlu0 %4915, %v2158_v14  }
 0x2ce   :  { %4269 = vperm.xlu1 %4916, %v2157_v46  }
 0x2d0   :  { %2099 = vmatpush1.bf16.msra.mxu1 %v2073_v25  ;;  %v4944_v25 = vld [vmem:[%s6143_s3 + $0x38] sm:$0xff]  }
 0x2d1   :  { %4284 = vperm.xlu0 %4915, %v2160_v50  }
 0x2d2   :  { %4279 = vperm.xlu1 %4916, %v2159_v52  }
 0x2d3   :  { %4471 = vmatmul.mubr.msk.bf16.gmra.mrb[4].mxu1 %vm1318_vm15, %v4934_v23 }
 0x2d4   :  { %2128 = vmatprep.mubr.bf16.mxu1 %v4964_v11 }
 0x2db   :  { %4478 = vmatmul.mubr.msk.bf16.vlgmr.msra.gmra.mrb[0].mxu1 %vm1318_vm15, %v4935_v30 }
 0x2dc   :  { %2138 = vmatprep.mubr.bf16.mxu1 %v4964_v11 }
 0x2e3   :  { %4479 = vmatmul.mubr.msk.bf16.gmra.mrb[4].mxu1 %vm1318_vm15, %v4936_v31 }
 0x2e4   :  { %3478 = vmatprep.mubr.bf16.mxu1 %v4964_v11 }
 0x2f7   :  { %v3409_v35 = vpop.permute.xlu1 %3408  ;;  %v3411_v1 = vpop.permute.xlu0 %3410 }
 0x2f8   :  { %v3416_v29 = vsel %vm82_vm3, %v3409_v35, %v3411_v1 }
 0x2f9   :  { %3446 = vmatprep.subr.bf16.mxu1 %v3416_v29 }
 0x2fa   :  { %4574 = vmatpush1.bf16.msk.msra.mxu1 %vm5685_vm14, %v3409_v35 }
 0x2fb   :  { %v3413_v47 = vpop.permute.xlu1 %3412  ;;  %v3415_v49 = vpop.permute.xlu0 %3414 }
 0x2fc   :  { %v3417_v51 = vsel %vm82_vm3, %v3413_v47, %v3415_v49 }
 0x2fd   :  { %3448 = vmatprep.subr.bf16.mxu1 %v3417_v51 }
 0x2fe   :  { %4576 = vmatpush1.bf16.msk.msra.mxu1 %vm5685_vm14, %v3413_v47 }
 0x2ff   :  { %v3385_v55 = vpop.permute.xlu0 %3384 }
 0x300   :  { %v3383_v57 = vpop.permute.xlu1 %3382 }
 0x301   :  { %v3395_v58 = vsel %vm67_vm1, 0, %v3383_v57  ;;  %v3390_v60 = vsel %vm67_vm1, %v3383_v57, %v3385_v55  ;;  %4577 = vmatmul.mubr.msk.bf16.vlgmr.msra.gmra.mrb[8].mxu1 %vm1318_vm15, %v4937_v54  ;;  %v4946_v55 = vld [vmem:[%s6143_s3 + $0x48] sm:$0xff]  }
 0x302   :  { %v3400_v61 = vmul.bf16 %v3395_v58, %v5702_v41  ;;  %v3401_v0 = vmul.bf16 %v3390_v60, %v5695_v4  ;;  %3488 = vmatprep.mubr.bf16.mxu1 %v4964_v11 }
 0x303   :  { %v3389_v5 = vpop.permute.xlu0 %3388 }
 0x304   :  { %v3387_v33 = vpop.permute.xlu1 %3386  ;;  %3515 = vmatprep.subr.bf16.mxu1 %v3401_v0 }
 0x305   :  { %v3398_v19 = vsel %vm67_vm1, 0, %v3387_v33  ;;  %v3391_v6 = vsel %vm67_vm1, %v3387_v33, %v3389_v5  ;;  %3516 = vmatpush1.bf16.msra.mxu1 %v3400_v61  ;;  %v4947_v61 = vld [vmem:[%s6143_s3 + $0x50] sm:$0xff]  }
 0x306   :  { %v3402_v8 = vmul.bf16 %v3398_v19, %v5702_v41  ;;  %v3403_v17 = vmul.bf16 %v3391_v6, %v5695_v4 }
 0x307   :  { %v3571_v22 = vpop.permute.xlu0 %3570 }
 0x308   :  { %v3569_v27 = vpop.permute.xlu1 %3568  ;;  %3517 = vmatprep.subr.bf16.mxu1 %v3403_v17 }
 0x309   :  { %v3576_v28 = vsel %vm310_vm7, %v3569_v27, %v3571_v22  ;;  %3518 = vmatpush1.bf16.msra.mxu1 %v3402_v8  ;;  %v3581_v20 = vsel %vm310_vm7, 0, %v3569_v27  ;;  %v4949_v27 = vld [vmem:[%s6143_s3 + $0x60] sm:$0xff]  }
 0x30a   :  { %v3587_v34 = vmul.bf16 %v3576_v28, %v5716_v56  ;;  %4578 = vmatmul.mubr.msk.bf16.gmra.mrb[12].mxu1 %vm1318_vm15, %v4938_v21  ;;  %v3586_v24 = vmul.bf16 %v3581_v20, %v5729_v44  ;;  %v4948_v21 = vld [vmem:[%s6143_s3 + $0x58] sm:$0xff]  }
 0x30b   :  { %v3575_v37 = vpop.permute.xlu0 %3574  ;;  %3547 = vmatprep.mubr.bf16.mxu1 %v4964_v11 }
 0x30c   :  { %v3573_v38 = vpop.permute.xlu1 %3572  ;;  %3610 = vmatprep.subr.bf16.mxu1 %v3587_v34 }
 0x30d   :  { %v3577_v26 = vsel %vm310_vm7, %v3573_v38, %v3575_v37  ;;  %v3584_v32 = vsel %vm310_vm7, 0, %v3573_v38 }
 0x30e   :  { %v3589_v36 = vmul.bf16 %v3577_v26, %v5716_v56  ;;  %v3588_v40 = vmul.bf16 %v3584_v32, %v5729_v44 }
 0x30f   :  { %v3674_v16 = vpop.permute.xlu0 %3673 }
 0x310   :  { %v3672_v13 = vpop.permute.xlu1 %3671 }
 0x311   :  { %v3679_v39 = vsel %vm441_vm9, %v3672_v13, %v3674_v16  ;;  %v3684_v46 = vsel %vm441_vm9, 0, %v3672_v13 }
 0x312   :  { %4581 = vmatmul.mubr.msk.bf16.vlgmr.msra.gmra.mrb[8].mxu1 %vm1318_vm15, %v4939_v42  ;;  %v3690_v43 = vmul.bf16 %v3679_v39, %v5695_v4  ;;  %v3689_v12 = vmul.bf16 %v3684_v46, %v5702_v41  ;;  %v4950_v42 = vld [vmem:[%s6143_s3 + $0x68] sm:$0xff]  }
 0x313   :  { %3611 = vmatpush1.bf16.msra.mxu1 %v3586_v24  ;;  %3557 = vmatprep.mubr.bf16.mxu1 %v4964_v11  ;;  %v3678_v14 = vpop.permute.xlu0 %3677  ;;  %v4951_v24 = vld [vmem:[%s6143_s3 + $0x70] sm:$0xff]  }
 0x314   :  { %3612 = vmatprep.subr.bf16.mxu1 %v3589_v36  ;;  %v3676_v3 = vpop.permute.xlu1 %3675 }
 0x315   :  { %v3680_v50 = vsel %vm441_vm9, %v3676_v3, %v3678_v14  ;;  %v3687_v52 = vsel %vm441_vm9, 0, %v3676_v3  ;;  %v4952_v3 = vld [vmem:[%s6143_s3 + $0x78] sm:$0xff]  }
 0x316   :  { %v3692_v62 = vmul.bf16 %v3680_v50, %v5695_v4  ;;  %v3691_v63 = vmul.bf16 %v3687_v52, %v5702_v41 }
 0x317   :  { %3613 = vmatpush1.bf16.msra.mxu1 %v3588_v40  ;;  %v3856_v23 = vpop.permute.xlu0 %3855 }
 0x318   :  { %3713 = vmatprep.subr.bf16.mxu1 %v3690_v43  ;;  %v3858_v10 = vpop.permute.xlu1 %3857 }
 0x319   :  { %v3868_v15 = vsel %vm690_vm10, %v3858_v10, 0 }
 0x31a   :  { %4582 = vmatmul.mubr.msk.bf16.gmra.mrb[12].mxu1 %vm1318_vm15, %v4940_v45 }
 0x31b   :  { %3642 = vmatprep.mubr.bf16.mxu1 %v4964_v11  ;;  %v3860_v35 = vpop.permute.xlu0 %3859 }
 0x31c   :  { %v3862_v30 = vpop.permute.xlu1 %3861 }
 0x31d   :  { %v3871_v31 = vsel %vm690_vm10, %v3862_v30, 0  ;;  %v3864_v47 = vsel %vm690_vm10, %v3860_v35, %v3862_v30 }
 0x31e   :  { %v3875_v51 = vmul.bf16 %v3864_v47, %v5729_v44 }
 0x31f   :  { %v3959_v57 = vpop.permute.xlu0 %3958 }
 0x320   :  { %v3961_v1 = vpop.permute.xlu1 %3960 }
 0x321   :  { %v3971_v49 = vsel %vm821_vm11, %v3961_v1, 0  ;;  %v3966_v60 = vsel %vm821_vm11, %v3959_v57, %v3961_v1 }
 0x322   :  { %4589 = vmatmul.mubr.msk.bf16.vlgmr.msra.gmra.mrb[8].mxu1 %vm1318_vm15, %v4941_v48  ;;  %v3977_v54 = vmul.bf16 %v3971_v49, %v5695_v4  ;;  %v3976_v33 = vmul.bf16 %v3966_v60, %v5702_v41 }
 0x323   :  { %3714 = vmatpush1.bf16.msra.mxu1 %v3689_v12  ;;  %3652 = vmatprep.mubr.bf16.mxu1 %v4964_v11  ;;  %v3963_v5 = vpop.permute.xlu0 %3962 }
 0x324   :  { %3715 = vmatprep.subr.bf16.mxu1 %v3692_v62  ;;  %v3965_v58 = vpop.permute.xlu1 %3964 }
 0x325   :  { %v3974_v0 = vsel %vm821_vm11, %v3965_v58, 0  ;;  %v3967_v6 = vsel %vm821_vm11, %v3963_v5, %v3965_v58 }
 0x326   :  { %v3979_v19 = vmul.bf16 %v3974_v0, %v5695_v4  ;;  %v3978_v17 = vmul.bf16 %v3967_v6, %v5702_v41 }
 0x327   :  { %3716 = vmatpush1.bf16.msra.mxu1 %v3691_v63  ;;  %v4064_v22 = vpop.permute.xlu0 %4063 }
 0x328   :  { %3794 = vmatprep.subr.bf16.mxu1 %v5766_v59  ;;  %v3874_v59 = vmul.bf16 %v3868_v15, %v5716_v56  ;;  %v4062_v8 = vpop.permute.xlu1 %4061 }
 0x329   :  { %v4069_v41 = vsel %vm952_vm12, %v4062_v8, %v4064_v22 }
 0x32a   :  { %4590 = vmatmul.mubr.msk.bf16.gmra.mrb[12].mxu1 %vm1318_vm15, %v4942_v2 }
 0x32b   :  { %3745 = vmatprep.mubr.bf16.mxu1 %v4964_v11  ;;  %v4068_v34 = vpop.permute.xlu0 %4067 }
 0x32c   :  { %v4066_v4 = vpop.permute.xlu1 %4065 }
 0x32d   :  { %v4070_v38 = vsel %vm952_vm12, %v4066_v4, %v4068_v34 }
 0x32f   :  { %v4161_v26 = vpop.permute.xlu0 %4160 }
 0x330   :  { %v4163_v28 = vpop.permute.xlu1 %4162 }
 0x331   :  { %v4173_v37 = vsel %vm1079_vm13, %v4163_v28, 0  ;;  %v4168_v16 = vsel %vm1079_vm13, %v4161_v26, %v4163_v28 }
 0x332   :  { %4597 = vmatmul.mubr.msk.bf16.vlgmr.msra.gmra.mrb[8].mxu1 %vm1318_vm15, %v4943_v7  ;;  %v4179_v20 = vmul.bf16 %v4173_v37, %v5716_v56  ;;  %v4178_v39 = vmul.bf16 %v4168_v16, %v5729_v44 }
 0x333   :  { %3795 = vmatpush1.bf16.msra.mxu1 %v5764_v53  ;;  %3755 = vmatprep.mubr.bf16.mxu1 %v4964_v11  ;;  %v3863_v53 = vsel %vm690_vm10, %v3856_v23, %v3858_v10  ;;  %v4165_v36 = vpop.permute.xlu0 %4164 }
 0x334   :  { %3796 = vmatprep.subr.bf16.mxu1 %v5776_v18  ;;  %v4945_v18 = vld [vmem:[%s6143_s3 + $0x40] sm:$0xff]   ;;  %v3873_v29 = vmul.bf16 %v3863_v53, %v5729_v44  ;;  %v4167_v13 = vpop.permute.xlu1 %4166 }
 0x335   :  { %v4176_v32 = vsel %vm1079_vm13, %v4167_v13, 0  ;;  %v4169_v43 = vsel %vm1079_vm13, %v4165_v36, %v4167_v13 }
 0x336   :  { %v4181_v40 = vmul.bf16 %v4176_v32, %v5716_v56  ;;  %v4180_v45 = vmul.bf16 %v4169_v43, %v5729_v44  ;;  %v4954_v44 = vld [vmem:[%s6143_s3 + $0x88] sm:$0xff]  }
 0x337   :  { %3797 = vmatpush1.bf16.msra.mxu1 %v5774_v9  ;;  %v3876_v9 = vmul.bf16 %v3871_v31, %v5716_v56  ;;  %v4953_v56 = vld [vmem:[%s6143_s3 + $0x80] sm:$0xff]  }
 0x338   :  { %3897 = vmatprep.subr.bf16.mxu1 %v3874_v59 }
 0x33a   :  { %4598 = vmatmul.mubr.msk.bf16.gmra.mrb[12].mxu1 %vm1318_vm15, %v4944_v25 }
 0x33b   :  { %3826 = vmatprep.mubr.bf16.mxu1 %v4964_v11 }
 0x342   :  { %4605 = vmatmul.mubr.msk.bf16.vlgmr.msra.gmra.mrb[8].mxu1 %vm1318_vm15, %v4945_v18 }
 0x343   :  { %3898 = vmatpush1.bf16.msra.mxu1 %v3873_v29  ;;  %3836 = vmatprep.mubr.bf16.mxu1 %v4964_v11 }
 0x344   :  { %3899 = vmatprep.subr.bf16.mxu1 %v3876_v9  ;;  %v2169_v12 = vpop.permute.xlu0 %2168 }
 0x345   :  { %v2164_v14 = vpop.permute.xlu1 %2163 }
 0x347   :  { %3900 = vmatpush1.bf16.msra.mxu1 %v3875_v51 }
 0x348   :  { %4000 = vmatprep.subr.bf16.mxu1 %v3977_v54  ;;  %v2179_v18 = vpop.permute.xlu0 %2178 }
 0x349   :  { %v2174_v25 = vpop.permute.xlu1 %2173 }
 0x34a   :  { %4606 = vmatmul.mubr.msk.bf16.gmra.mrb[12].mxu1 %vm1318_vm15, %v4946_v55 }
 0x34b   :  { %3929 = vmatprep.mubr.bf16.mxu1 %v4964_v11 }
 0x34d   :  { %v4270_v55 = vpop.permute.xlu1 %4269 }
 0x351   :  { %v4280_v4 = vpop.permute.xlu1 %4279 }
 0x352   :  { %4613 = vmatmul.mubr.msk.bf16.vlgmr.msra.gmra.mrb[8].mxu1 %vm1318_vm15, %v4947_v61  ;;  %v4275_v61 = vpop.permute.xlu0 %4274 }
 0x353   :  { %4001 = vmatpush1.bf16.msra.mxu1 %v3976_v33  ;;  %3939 = vmatprep.mubr.bf16.mxu1 %v4964_v11 }
 0x354   :  { %4002 = vmatprep.subr.bf16.mxu1 %v3979_v19 }
 0x357   :  { %4003 = vmatpush1.bf16.msra.mxu1 %v3978_v17 }
 0x358   :  { %4629 = vmatprep.subr.msk.bf16.mxu1 %vm952_vm12, %v4064_v22 }
 0x35a   :  { %4614 = vmatmul.mubr.msk.bf16.gmra.mrb[12].mxu1 %vm1318_vm15, %v4948_v21 }
 0x35b   :  { %4032 = vmatprep.mubr.bf16.mxu1 %v4964_v11 }
 0x362   :  { %4621 = vmatmul.mubr.msk.bf16.vlgmr.msra.gmra.mrb[8].mxu1 %vm1318_vm15, %v4949_v27 }
 0x363   :  { %4100 = vmatpush1.bf16.msra.mxu1 %v4069_v41  ;;  %4042 = vmatprep.mubr.bf16.mxu1 %v4964_v11 }
 0x364   :  { %4630 = vmatprep.subr.msk.bf16.mxu1 %vm952_vm12, %v4068_v34  ;;  %v4285_v34 = vpop.permute.xlu0 %4284 }
 0x367   :  { %4102 = vmatpush1.bf16.msra.mxu1 %v4070_v38 }
 0x368   :  { %4202 = vmatprep.subr.bf16.mxu1 %v4179_v20 }
 0x36a   :  { %4622 = vmatmul.mubr.msk.bf16.gmra.mrb[12].mxu1 %vm1318_vm15, %v4950_v42 }
 0x36b   :  { %4131 = vmatprep.mubr.bf16.mxu1 %v4964_v11 }
 0x372   :  { %4631 = vmatmul.mubr.msk.bf16.vlgmr.msra.gmra.mrb[8].mxu1 %vm1318_vm15, %v4951_v24 }
 0x373   :  { %4203 = vmatpush1.bf16.msra.mxu1 %v4178_v39  ;;  %4141 = vmatprep.mubr.bf16.mxu1 %v4964_v11 }
 0x374   :  { %4204 = vmatprep.subr.bf16.mxu1 %v4181_v40 }
 0x377   :  { %4205 = vmatpush1.bf16.msra.mxu1 %v4180_v45 }
 0x37a   :  { %4632 = vmatmul.mubr.msk.bf16.gmra.mrb[12].mxu1 %vm1318_vm15, %v4952_v3 }
 0x37b   :  { %4234 = vmatprep.mubr.bf16.mxu1 %v4964_v11 }
 0x382   :  { %4639 = vmatmul.mubr.msk.bf16.vlgmr.msra.gmra.mrb[8].mxu1 %vm1318_vm15, %v4953_v56 }
 0x383   :  { %4244 = vmatprep.mubr.bf16.mxu1 %v4964_v11 }
 0x38a   :  { %4640 = vmatmul.mubr.msk.bf16.gmra.mrb[12].mxu1 %vm1318_vm15, %v4954_v44 }
 0x3ae   :  { %v2130_v46 = vpop.f32.mrb[0].mxu1 }
 0x3af   :  { %v2181_v48 = vadd.f32 %v2164_v14, %v2130_v46  ;;  %v2132_v50 = vpop.f32.mrb[1].mxu1 }
 0x3b0   :  { %v2182_v52 = vadd.f32 %v2164_v14, %v2132_v50  ;;  %v2134_v62 = vpop.f32.mrb[2].mxu1 }
 0x3b1   :  { %v2189_v63 = vmax.f32 %v2181_v48, 0.0  ;;  %v2183_v2 = vadd.f32 %v2169_v12, %v2134_v62  ;;  %v2136_v7 = vpop.f32.mrb[3].mxu1 }
 0x3b2   :  { %v2190_v10 = vmax.f32 %v2182_v52, 0.0  ;;  %v2184_v15 = vadd.f32 %v2169_v12, %v2136_v7 }
 0x3b3   :  { %2197 = vst [vmem:[%s6145_s5] sm:$0xff] %v2189_v63  ;;  %v2191_v11 = vmax.f32 %v2183_v2, 0.0 }
 0x3b4   :  { %2198 = vst [vmem:[%s6145_s5 + $0x8] sm:$0xff] %v2190_v10  ;;  %v2192_v59 = vmax.f32 %v2184_v15, 0.0 }
 0x3b5   :  { %2199 = vst [vmem:[%s6145_s5 + $0x10] sm:$0xff] %v2191_v11 }
 0x3b6   :  { %2200 = vst [vmem:[%s6145_s5 + $0x18] sm:$0xff] %v2192_v59  ;;  %v2140_v23 = vpop.f32.mrb[4].mxu1 }
 0x3b7   :  { %v2185_v30 = vadd.f32 %v2174_v25, %v2140_v23  ;;  %v2142_v53 = vpop.f32.mrb[5].mxu1 }
 0x3b8   :  { %v2186_v31 = vadd.f32 %v2174_v25, %v2142_v53  ;;  %v2144_v35 = vpop.f32.mrb[6].mxu1 }
 0x3b9   :  { %v2193_v1 = vmax.f32 %v2185_v30, 0.0  ;;  %v2187_v29 = vadd.f32 %v2179_v18, %v2144_v35  ;;  %v2146_v9 = vpop.f32.mrb[7].mxu1 }
 0x3ba   :  { %v2194_v47 = vmax.f32 %v2186_v31, 0.0  ;;  %v2188_v49 = vadd.f32 %v2179_v18, %v2146_v9 }
 0x3bb   :  { %2201 = vst [vmem:[%s6145_s5 + $0x20] sm:$0xff] %v2193_v1  ;;  %v2195_v51 = vmax.f32 %v2187_v29, 0.0 }
 0x3bc   :  { %2202 = vst [vmem:[%s6145_s5 + $0x28] sm:$0xff] %v2194_v47  ;;  %v2196_v54 = vmax.f32 %v2188_v49, 0.0 }
 0x3bd   :  { %2203 = vst [vmem:[%s6145_s5 + $0x30] sm:$0xff] %v2195_v51 }
 0x3be   :  { %2204 = vst [vmem:[%s6145_s5 + $0x38] sm:$0xff] %v2196_v54 }
 0x455   :  { %v4236_v57 = vpop.f32.mrb[8].mxu1 }
 0x456   :  { %v4287_v58 = vadd.f32 %v4270_v55, %v4236_v57  ;;  %v4238_v60 = vpop.f32.mrb[9].mxu1 }
 0x457   :  { %v4288_v0 = vadd.f32 %v4270_v55, %v4238_v60  ;;  %v4240_v5 = vpop.f32.mrb[10].mxu1 }
 0x458   :  { %v4295_v33 = vmax.f32 %v4287_v58, 0.0  ;;  %v4289_v19 = vadd.f32 %v4275_v61, %v4240_v5  ;;  %v4242_v6 = vpop.f32.mrb[11].mxu1 }
 0x459   :  { %v4296_v8 = vmax.f32 %v4288_v0, 0.0  ;;  %v4290_v17 = vadd.f32 %v4275_v61, %v4242_v6 }
 0x45a   :  { %4641 = vst [vmem:[%s6145_s5 + $0x40] sm:$0xff] %v4295_v33  ;;  %v4297_v21 = vmax.f32 %v4289_v19, 0.0 }
 0x45b   :  { %4642 = vst [vmem:[%s6145_s5 + $0x48] sm:$0xff] %v4296_v8  ;;  %v4298_v22 = vmax.f32 %v4290_v17, 0.0 }
 0x45c   :  { %4643 = vst [vmem:[%s6145_s5 + $0x50] sm:$0xff] %v4297_v21 }
 0x45d   :  { %4644 = vst [vmem:[%s6145_s5 + $0x58] sm:$0xff] %v4298_v22  ;;  %v4246_v27 = vpop.f32.mrb[12].mxu1 }
 0x45e   :  { %v4291_v28 = vadd.f32 %v4280_v4, %v4246_v27  ;;  %v4248_v41 = vpop.f32.mrb[13].mxu1 }
 0x45f   :  { %v4292_v37 = vadd.f32 %v4280_v4, %v4248_v41  ;;  %v4250_v38 = vpop.f32.mrb[14].mxu1 }
 0x460   :  { %v4299_v20 = vmax.f32 %v4291_v28, 0.0  ;;  %v4293_v42 = vadd.f32 %v4285_v34, %v4250_v38  ;;  %v4252_v26 = vpop.f32.mrb[15].mxu1 }
 0x461   :  { %v4300_v13 = vmax.f32 %v4292_v37, 0.0  ;;  %v4294_v16 = vadd.f32 %v4285_v34, %v4252_v26 }
 0x462   :  { %4645 = vst [vmem:[%s6145_s5 + $0x60] sm:$0xff] %v4299_v20  ;;  %v4301_v24 = vmax.f32 %v4293_v42, 0.0 }
 0x463   :  { %4646 = vst [vmem:[%s6145_s5 + $0x68] sm:$0xff] %v4300_v13  ;;  %v4302_v32 = vmax.f32 %v4294_v16, 0.0 }
 0x464   :  { %4647 = vst [vmem:[%s6145_s5 + $0x70] sm:$0xff] %v4301_v24 }
 0x465   :  { %4648 = vst [vmem:[%s6145_s5 + $0x78] sm:$0xff] %v4302_v32 }

</bundles_post_ra>
